<compile_context>
chip_gen: v7x
topology: tpu7x:2x2x1
jax: 0.10.0
libtpu: 0.0.40
codegen_flags: <defaults>
</compile_context>

<pallas_src>
import math

import jax
import jax.numpy as jnp
from jax import lax
from jax.experimental import pallas as pl
from jax.experimental.pallas import tpu as pltpu

# Problem sizes (the args of the module).
B = 2            # batch
S = 16           # max_seq_length == sequence length
H = 32           # hidden_size
NH = 4           # num_attention_heads
DH = H // NH     # attention_head_size
LOCAL = 2        # args.local (band half-width of the local mask)
POOL = 4         # args.pool_size
SP = S // POOL   # pooled sequence length
FF_MULT = 4      # args.ffn_multiplier
FF = H * FF_MULT
LN_EPS = 1e-12
ROWS = B * S     # batch fused into the row (sublane) axis
NEG = -10000.0   # additive mask value used by the module


def _softmax_last(s):
    m = jnp.max(s, axis=-1, keepdims=True)
    e = jnp.exp(s - m)
    denom = jnp.sum(e, axis=-1, keepdims=True)
    return e * pl.reciprocal(denom, approx=True)


def _layer_norm(h, gamma, beta):
    mean = jnp.mean(h, axis=-1, keepdims=True)
    c = h - mean
    var = jnp.mean(c * c, axis=-1, keepdims=True)
    return c * lax.rsqrt(var + LN_EPS) * gamma + beta


def _split_heads(a):
    # [R, H_like] -> [NH, R, DH]: lane slices stacked along a new leading axis
    # so both attention matmuls run as a single head-batched dot per stage.
    return jnp.stack([a[:, h * DH:(h + 1) * DH] for h in range(NH)], axis=0)


def _merge_heads(a):
    # [NH, R, DH] -> [R, H]: one lane-axis concatenate (no VMEM round-trip).
    return jnp.concatenate([a[h] for h in range(NH)], axis=-1)


def metaformer_block_kernel(
    x_ref, mask1_ref, mask2_ref, w_qkv_ref, b_qkv_ref,
    w_ff1_ref, b_ff1_ref, w_ff2_ref, b_ff2_ref, ln_ref,
    out_ref,
):
    x = x_ref[...]          # [ROWS, H]   (batch fused into rows)
    mask1 = mask1_ref[...]  # [ROWS, ROWS]  local band mask + cross-batch block mask
    mask2 = mask2_ref[...]  # [ROWS, B*SP]  cross-batch block mask for pooled keys

    # ---- stage 1: fused QKV projection (1/sqrt(DH) pre-folded into Wq, bq) ----
    qkv1 = jnp.dot(x, w_qkv_ref[0],
                   preferred_element_type=jnp.float32) + b_qkv_ref[0]   # [ROWS, 3H]

    q1 = _split_heads(qkv1[:, 0:H])          # [NH, ROWS, DH]
    k1 = _split_heads(qkv1[:, H:2 * H])      # [NH, ROWS, DH]
    v1 = _split_heads(qkv1[:, 2 * H:3 * H])  # [NH, ROWS, DH]

    # Banded (local-mask) attention, head-batched; cross-batch keys masked out
    # via mask1 (exp(-1e4) underflows to exactly 0, so results match the
    # per-batch reference bit-for-bit up to the softmax rounding).
    s1 = jnp.einsum('hqd,hkd->hqk', q1, k1,
                    preferred_element_type=jnp.float32)                 # [NH, ROWS, ROWS]
    p1 = _softmax_last(s1 + mask1[None, :, :])
    out1 = _merge_heads(jnp.einsum('hqk,hkd->hqd', p1, v1,
                                   preferred_element_type=jnp.float32)) # [ROWS, H]

    # ---- stage 2: fused QKV projection of the stage-1 output -----------------
    qkv2 = jnp.dot(out1, w_qkv_ref[1],
                   preferred_element_type=jnp.float32) + b_qkv_ref[1]   # [ROWS, 3H]

    # MaxPool1d(pool, pool) over the sequence axis of K2|V2 (lanes H:3H),
    # vectorized: one reshape + one cross-sublane max.  Windows never cross
    # the batch boundary because S % POOL == 0.
    pooled = jnp.max(qkv2[:, H:3 * H].reshape(B * SP, POOL, 2 * H), axis=1)  # [B*SP, 2H]

    q2 = _split_heads(qkv2[:, 0:H])          # [NH, ROWS, DH]
    k2 = _split_heads(pooled[:, 0:H])        # [NH, B*SP, DH]
    v2 = _split_heads(pooled[:, H:2 * H])    # [NH, B*SP, DH]

    # Attention over pooled keys / values (no local mask; cross-batch masked).
    s2 = jnp.einsum('hqd,hkd->hqk', q2, k2,
                    preferred_element_type=jnp.float32)                 # [NH, ROWS, B*SP]
    p2 = _softmax_last(s2 + mask2[None, :, :])
    ctx2 = _merge_heads(jnp.einsum('hqk,hkd->hqd', p2, v2,
                                   preferred_element_type=jnp.float32)) # [ROWS, H]

    # ---- attention residual + LayerNorm(eps=1e-12) ----------------------------
    attn_out = _layer_norm(ctx2 + x, ln_ref[0:1, :], ln_ref[1:2, :])

    # ---- Intermediate FFN: dense -> relu -> dense -> residual + LayerNorm -----
    h1 = jnp.maximum(
        jnp.dot(attn_out, w_ff1_ref[...],
                preferred_element_type=jnp.float32) + b_ff1_ref[...], 0.0)
    h2 = jnp.dot(h1, w_ff2_ref[...],
                 preferred_element_type=jnp.float32) + b_ff2_ref[...]
    out_ref[...] = _layer_norm(h2 + attn_out, ln_ref[2:3, :], ln_ref[3:4, :])


def metaformer_block(x, params, local_mask, attention_mask=None):
    """x: [B, S, H] float32.  attention_mask is unused by this module's forward."""
    del attention_mask  # PoolingSelfAttention only uses its local_mask buffer.

    scale = 1.0 / math.sqrt(DH)   # fold score scaling into the query weights/biases
    w_qkv = jnp.stack([
        jnp.concatenate([params["wq"] * scale, params["wk"], params["wv"]], axis=1),
        jnp.concatenate([params["wq2"] * scale, params["wk2"], params["wv2"]], axis=1),
    ], axis=0)                                                   # [2, H, 3H]
    b_qkv = jnp.stack([
        jnp.concatenate([params["bq"] * scale, params["bk"], params["bv"]], axis=1),
        jnp.concatenate([params["bq2"] * scale, params["bk2"], params["bv2"]], axis=1),
    ], axis=0)                                                   # [2, 1, 3H]
    ln = jnp.concatenate([params["gamma"], params["beta"],
                          params["gamma2"], params["beta2"]], axis=0)   # [4, H]

    # Fuse batch into the sublane/row axis and pre-build the combined additive
    # masks so the kernel never loops over (batch, head).
    x2d = x.reshape(ROWS, H)
    row_b = jnp.repeat(jnp.arange(B), S)                       # [ROWS]
    col_b = jnp.repeat(jnp.arange(B), SP)                      # [B*SP]
    mask1 = jnp.where(row_b[:, None] == row_b[None, :],
                      jnp.tile(local_mask, (B, B)), NEG).astype(jnp.float32)  # [ROWS, ROWS]
    mask2 = jnp.where(row_b[:, None] == col_b[None, :],
                      0.0, NEG).astype(jnp.float32)                            # [ROWS, B*SP]

    vmem = pl.BlockSpec(memory_space=pltpu.MemorySpace.VMEM)
    out2d = pl.pallas_call(
        metaformer_block_kernel,
        out_shape=jax.ShapeDtypeStruct((ROWS, H), jnp.float32),
        in_specs=[vmem] * 10,
        out_specs=pl.BlockSpec(memory_space=pltpu.MemorySpace.VMEM),
    )(x2d, mask1, mask2, w_qkv, b_qkv,
      params["wff1"], params["bff1"], params["wff2"], params["bff2"], ln)
    return out2d.reshape(B, S, H)


def init_params(key):
    keys = jax.random.split(key, 9)
    p = {}
    for k, name in zip(keys[:6], ("q", "k", "v", "q2", "k2", "v2")):
        kw, kb = jax.random.split(k)
        p["w" + name] = jax.random.normal(kw, (H, H), jnp.float32) * 0.02
        p["b" + name] = jax.random.normal(kb, (1, H), jnp.float32) * 0.02
    kw, kb = jax.random.split(keys[6])
    p["wff1"] = jax.random.normal(kw, (H, FF), jnp.float32) * 0.02
    p["bff1"] = jax.random.normal(kb, (1, FF), jnp.float32) * 0.02
    kw, kb = jax.random.split(keys[7])
    p["wff2"] = jax.random.normal(kw, (FF, H), jnp.float32) * 0.02
    p["bff2"] = jax.random.normal(kb, (1, H), jnp.float32) * 0.02
    kg = jax.random.split(keys[8], 4)
    p["gamma"] = 1.0 + 0.1 * jax.random.normal(kg[0], (1, H), jnp.float32)
    p["beta"] = 0.1 * jax.random.normal(kg[1], (1, H), jnp.float32)
    p["gamma2"] = 1.0 + 0.1 * jax.random.normal(kg[2], (1, H), jnp.float32)
    p["beta2"] = 0.1 * jax.random.normal(kg[3], (1, H), jnp.float32)
    return p


def make_local_mask():
    ones = jnp.ones((S, S), jnp.float32)
    return (jnp.triu(ones, k=LOCAL) + jnp.tril(ones, k=-LOCAL)) * NEG


def reference(x, p, mask):
    """Pure-JAX reference mirroring the PyTorch MetaFormerBlock forward (eval)."""
    def linear(a, w, b):
        return a @ w + b

    def heads(a):  # [B, Sx, H] -> [B, NH, Sx, DH]
        return a.reshape(a.shape[0], a.shape[1], NH, DH).transpose(0, 2, 1, 3)

    def attn(q, k, v, m):
        s = jnp.einsum("bhqd,bhkd->bhqk", q, k) / math.sqrt(DH)
        if m is not None:
            s = s + m
        pr = jax.nn.softmax(s, axis=-1)
        c = jnp.einsum("bhqk,bhkd->bhqd", pr, v)
        return c.transpose(0, 2, 1, 3).reshape(q.shape[0], q.shape[2], H)

    def layer_norm(h, g, b):
        mean = h.mean(-1, keepdims=True)
        var = ((h - mean) ** 2).mean(-1, keepdims=True)
        return (h - mean) / jnp.sqrt(var + LN_EPS) * g[0] + b[0]

    # PoolingSelfAttention
    q1 = heads(linear(x, p["wq"], p["bq"]))
    k1 = heads(linear(x, p["wk"], p["bk"]))
    v1 = heads(linear(x, p["wv"], p["bv"]))
    out1 = attn(q1, k1, v1, mask)

    q2 = heads(linear(out1, p["wq2"], p["bq2"]))
    k2f = linear(out1, p["wk2"], p["bk2"])
    v2f = linear(out1, p["wv2"], p["bv2"])
    pool = lambda a: jnp.max(a.reshape(a.shape[0], SP, POOL, H), axis=2)
    ctx2 = attn(q2, heads(pool(k2f)), heads(pool(v2f)), None)
    attn_out = layer_norm(ctx2 + x, p["gamma"], p["beta"])

    # Intermediate FFN (hidden_act='relu')
    f = jnp.maximum(linear(attn_out, p["wff1"], p["bff1"]), 0.0)
    f = linear(f, p["wff2"], p["bff2"])
    return layer_norm(f + attn_out, p["gamma2"], p["beta2"])


if __name__ == "__main__":
    key = jax.random.PRNGKey(0)
    kx, kp = jax.random.split(key)
    x = jax.random.normal(kx, (B, S, H), jnp.float32)
    params = init_params(kp)
    local_mask = make_local_mask()

    out = metaformer_block(x, params, local_mask)
    out = jax.block_until_ready(out)

    ref = reference(x, params, local_mask)
    assert out.shape == (B, S, H)
    assert jnp.allclose(out, ref, atol=1e-3, rtol=1e-3), "mismatch vs JAX reference"

    print("KERNEL_OK")
</pallas_src>

<mosaic_0001>
module attributes {stable_mosaic.version = 11 : i64} {
  func.func @metaformer_block_kernel(%arg0: memref<32x32xf32, #tpu.memory_space<vmem>>, %arg1: memref<32x32xf32, #tpu.memory_space<vmem>>, %arg2: memref<32x8xf32, #tpu.memory_space<vmem>>, %arg3: memref<2x32x96xf32, #tpu.memory_space<vmem>>, %arg4: memref<2x1x96xf32, #tpu.memory_space<vmem>>, %arg5: memref<32x128xf32, #tpu.memory_space<vmem>>, %arg6: memref<1x128xf32, #tpu.memory_space<vmem>>, %arg7: memref<128x32xf32, #tpu.memory_space<vmem>>, %arg8: memref<1x32xf32, #tpu.memory_space<vmem>>, %arg9: memref<4x32xf32, #tpu.memory_space<vmem>>, %arg10: memref<32x32xf32, #tpu.memory_space<vmem>>) attributes {dimension_semantics = [], scalar_prefetch = 0 : i64, scratch_operands = 0 : i64, tpu.core_type = #tpu.core_type<tc>} {
    %c0 = arith.constant 0 : index
    %c0_0 = arith.constant 0 : index
    %0 = vector.load %arg0[%c0, %c0_0] : memref<32x32xf32, #tpu.memory_space<vmem>>, vector<32x32xf32>
    %c0_1 = arith.constant 0 : index
    %c0_2 = arith.constant 0 : index
    %1 = vector.load %arg1[%c0_1, %c0_2] : memref<32x32xf32, #tpu.memory_space<vmem>>, vector<32x32xf32>
    %c0_3 = arith.constant 0 : index
    %c0_4 = arith.constant 0 : index
    %2 = vector.load %arg2[%c0_3, %c0_4] : memref<32x8xf32, #tpu.memory_space<vmem>>, vector<32x8xf32>
    %c0_5 = arith.constant 0 : index
    %c0_6 = arith.constant 0 : index
    %c0_7 = arith.constant 0 : index
    %3 = vector.load %arg3[%c0_5, %c0_6, %c0_7] : memref<2x32x96xf32, #tpu.memory_space<vmem>>, vector<1x32x96xf32>
    %4 = vector.shape_cast %3 : vector<1x32x96xf32> to vector<32x96xf32>
    %cst = arith.constant dense<0.000000e+00> : vector<32x96xf32>
    %5 = tpu.matmul %0, %4, %cst {dimension_numbers = #tpu.dot_dimension_numbers<[1], [0], [0], [1], [0, 0, 1, 1], [], []>} : vector<32x32xf32>, vector<32x96xf32>, vector<32x96xf32> -> vector<32x96xf32>
    %c0_8 = arith.constant 0 : index
    %c0_9 = arith.constant 0 : index
    %c0_10 = arith.constant 0 : index
    %6 = vector.load %arg4[%c0_8, %c0_9, %c0_10] : memref<2x1x96xf32, #tpu.memory_space<vmem>>, vector<1x1x96xf32>
    %7 = vector.shape_cast %6 : vector<1x1x96xf32> to vector<1x96xf32>
    %8 = vector.broadcast %7 : vector<1x96xf32> to vector<32x96xf32>
    %9 = arith.addf %5, %8 : vector<32x96xf32>
    %10 = vector.extract_strided_slice %9 {offsets = [0, 0], sizes = [32, 32], strides = [1, 1]} : vector<32x96xf32> to vector<32x32xf32>
    %11 = vector.extract_strided_slice %10 {offsets = [0, 0], sizes = [32, 8], strides = [1, 1]} : vector<32x32xf32> to vector<32x8xf32>
    %12 = vector.extract_strided_slice %10 {offsets = [0, 8], sizes = [32, 8], strides = [1, 1]} : vector<32x32xf32> to vector<32x8xf32>
    %13 = vector.extract_strided_slice %10 {offsets = [0, 16], sizes = [32, 8], strides = [1, 1]} : vector<32x32xf32> to vector<32x8xf32>
    %14 = vector.extract_strided_slice %10 {offsets = [0, 24], sizes = [32, 8], strides = [1, 1]} : vector<32x32xf32> to vector<32x8xf32>
    %15 = vector.shape_cast %11 : vector<32x8xf32> to vector<1x32x8xf32>
    %16 = vector.shape_cast %12 : vector<32x8xf32> to vector<1x32x8xf32>
    %17 = vector.shape_cast %13 : vector<32x8xf32> to vector<1x32x8xf32>
    %18 = vector.shape_cast %14 : vector<32x8xf32> to vector<1x32x8xf32>
    %19 = tpu.concatenate %15, %16, %17, %18 in 0 : vector<1x32x8xf32>, vector<1x32x8xf32>, vector<1x32x8xf32>, vector<1x32x8xf32> -> vector<4x32x8xf32>
    %20 = vector.extract_strided_slice %9 {offsets = [0, 32], sizes = [32, 32], strides = [1, 1]} : vector<32x96xf32> to vector<32x32xf32>
    %21 = vector.extract_strided_slice %20 {offsets = [0, 0], sizes = [32, 8], strides = [1, 1]} : vector<32x32xf32> to vector<32x8xf32>
    %22 = vector.extract_strided_slice %20 {offsets = [0, 8], sizes = [32, 8], strides = [1, 1]} : vector<32x32xf32> to vector<32x8xf32>
    %23 = vector.extract_strided_slice %20 {offsets = [0, 16], sizes = [32, 8], strides = [1, 1]} : vector<32x32xf32> to vector<32x8xf32>
    %24 = vector.extract_strided_slice %20 {offsets = [0, 24], sizes = [32, 8], strides = [1, 1]} : vector<32x32xf32> to vector<32x8xf32>
    %25 = vector.shape_cast %21 : vector<32x8xf32> to vector<1x32x8xf32>
    %26 = vector.shape_cast %22 : vector<32x8xf32> to vector<1x32x8xf32>
    %27 = vector.shape_cast %23 : vector<32x8xf32> to vector<1x32x8xf32>
    %28 = vector.shape_cast %24 : vector<32x8xf32> to vector<1x32x8xf32>
    %29 = tpu.concatenate %25, %26, %27, %28 in 0 : vector<1x32x8xf32>, vector<1x32x8xf32>, vector<1x32x8xf32>, vector<1x32x8xf32> -> vector<4x32x8xf32>
    %30 = vector.extract_strided_slice %9 {offsets = [0, 64], sizes = [32, 32], strides = [1, 1]} : vector<32x96xf32> to vector<32x32xf32>
    %31 = vector.extract_strided_slice %30 {offsets = [0, 0], sizes = [32, 8], strides = [1, 1]} : vector<32x32xf32> to vector<32x8xf32>
    %32 = vector.extract_strided_slice %30 {offsets = [0, 8], sizes = [32, 8], strides = [1, 1]} : vector<32x32xf32> to vector<32x8xf32>
    %33 = vector.extract_strided_slice %30 {offsets = [0, 16], sizes = [32, 8], strides = [1, 1]} : vector<32x32xf32> to vector<32x8xf32>
    %34 = vector.extract_strided_slice %30 {offsets = [0, 24], sizes = [32, 8], strides = [1, 1]} : vector<32x32xf32> to vector<32x8xf32>
    %35 = vector.shape_cast %31 : vector<32x8xf32> to vector<1x32x8xf32>
    %36 = vector.shape_cast %32 : vector<32x8xf32> to vector<1x32x8xf32>
    %37 = vector.shape_cast %33 : vector<32x8xf32> to vector<1x32x8xf32>
    %38 = vector.shape_cast %34 : vector<32x8xf32> to vector<1x32x8xf32>
    %39 = tpu.concatenate %35, %36, %37, %38 in 0 : vector<1x32x8xf32>, vector<1x32x8xf32>, vector<1x32x8xf32>, vector<1x32x8xf32> -> vector<4x32x8xf32>
    "tpu.trace_start"() <{level = 10 : i32, message = "hqd,hkd->hqk"}> : () -> ()
    %cst_11 = arith.constant dense<0.000000e+00> : vector<4x32x32xf32>
    %40 = tpu.matmul %19, %29, %cst_11 {dimension_numbers = #tpu.dot_dimension_numbers<[2], [2], [1], [1], [0, 0, 0, 1, 1, 1], [0], [0]>} : vector<4x32x8xf32>, vector<4x32x8xf32>, vector<4x32x32xf32> -> vector<4x32x32xf32>
    "tpu.trace_stop"() : () -> ()
    %41 = vector.shape_cast %1 : vector<32x32xf32> to vector<1x32x32xf32>
    %42 = vector.broadcast %41 : vector<1x32x32xf32> to vector<4x32x32xf32>
    %43 = arith.addf %40, %42 : vector<4x32x32xf32>
    %cst_12 = arith.constant dense<0xFF800000> : vector<4x32xf32>
    %44 = vector.multi_reduction <maximumf>, %43, %cst_12 [2] : vector<4x32x32xf32> to vector<4x32xf32>
    %45 = vector.shape_cast %44 : vector<4x32xf32> to vector<4x32x1xf32>
    %46 = vector.broadcast %45 : vector<4x32x1xf32> to vector<4x32x32xf32>
    %47 = arith.subf %43, %46 : vector<4x32x32xf32>
    %48 = math.exp %47 : vector<4x32x32xf32>
    %cst_13 = arith.constant dense<0.000000e+00> : vector<4x32xf32>
    %49 = vector.multi_reduction <add>, %48, %cst_13 [2] : vector<4x32x32xf32> to vector<4x32xf32>
    %50 = vector.shape_cast %49 : vector<4x32xf32> to vector<4x32x1xf32>
    %51 = tpu.reciprocal %50 {approx = true} : vector<4x32x1xf32> -> vector<4x32x1xf32>
    %52 = vector.broadcast %51 : vector<4x32x1xf32> to vector<4x32x32xf32>
    %53 = arith.mulf %48, %52 : vector<4x32x32xf32>
    "tpu.trace_start"() <{level = 10 : i32, message = "hqk,hkd->hqd"}> : () -> ()
    %cst_14 = arith.constant dense<0.000000e+00> : vector<4x32x8xf32>
    %54 = tpu.matmul %53, %39, %cst_14 {dimension_numbers = #tpu.dot_dimension_numbers<[2], [1], [1], [2], [0, 0, 0, 1, 1, 2], [0], [0]>} : vector<4x32x32xf32>, vector<4x32x8xf32>, vector<4x32x8xf32> -> vector<4x32x8xf32>
    "tpu.trace_stop"() : () -> ()
    %55 = vector.extract_strided_slice %54 {offsets = [0, 0, 0], sizes = [1, 32, 8], strides = [1, 1, 1]} : vector<4x32x8xf32> to vector<1x32x8xf32>
    %56 = vector.shape_cast %55 : vector<1x32x8xf32> to vector<32x8xf32>
    %57 = vector.extract_strided_slice %54 {offsets = [1, 0, 0], sizes = [1, 32, 8], strides = [1, 1, 1]} : vector<4x32x8xf32> to vector<1x32x8xf32>
    %58 = vector.shape_cast %57 : vector<1x32x8xf32> to vector<32x8xf32>
    %59 = vector.extract_strided_slice %54 {offsets = [2, 0, 0], sizes = [1, 32, 8], strides = [1, 1, 1]} : vector<4x32x8xf32> to vector<1x32x8xf32>
    %60 = vector.shape_cast %59 : vector<1x32x8xf32> to vector<32x8xf32>
    %61 = vector.extract_strided_slice %54 {offsets = [3, 0, 0], sizes = [1, 32, 8], strides = [1, 1, 1]} : vector<4x32x8xf32> to vector<1x32x8xf32>
    %62 = vector.shape_cast %61 : vector<1x32x8xf32> to vector<32x8xf32>
    %63 = tpu.concatenate %56, %58, %60, %62 in 1 : vector<32x8xf32>, vector<32x8xf32>, vector<32x8xf32>, vector<32x8xf32> -> vector<32x32xf32>
    %c1 = arith.constant 1 : index
    %c0_15 = arith.constant 0 : index
    %c0_16 = arith.constant 0 : index
    %64 = vector.load %arg3[%c1, %c0_15, %c0_16] : memref<2x32x96xf32, #tpu.memory_space<vmem>>, vector<1x32x96xf32>
    %65 = vector.shape_cast %64 : vector<1x32x96xf32> to vector<32x96xf32>
    %cst_17 = arith.constant dense<0.000000e+00> : vector<32x96xf32>
    %66 = tpu.matmul %63, %65, %cst_17 {dimension_numbers = #tpu.dot_dimension_numbers<[1], [0], [0], [1], [0, 0, 1, 1], [], []>} : vector<32x32xf32>, vector<32x96xf32>, vector<32x96xf32> -> vector<32x96xf32>
    %c1_18 = arith.constant 1 : index
    %c0_19 = arith.constant 0 : index
    %c0_20 = arith.constant 0 : index
    %67 = vector.load %arg4[%c1_18, %c0_19, %c0_20] : memref<2x1x96xf32, #tpu.memory_space<vmem>>, vector<1x1x96xf32>
    %68 = vector.shape_cast %67 : vector<1x1x96xf32> to vector<1x96xf32>
    %69 = vector.broadcast %68 : vector<1x96xf32> to vector<32x96xf32>
    %70 = arith.addf %66, %69 : vector<32x96xf32>
    %71 = vector.extract_strided_slice %70 {offsets = [0, 32], sizes = [32, 64], strides = [1, 1]} : vector<32x96xf32> to vector<32x64xf32>
    %72 = vector.shape_cast %71 : vector<32x64xf32> to vector<8x4x64xf32>
    %cst_21 = arith.constant dense<0xFF800000> : vector<8x64xf32>
    %73 = vector.multi_reduction <maximumf>, %72, %cst_21 [1] : vector<8x4x64xf32> to vector<8x64xf32>
    %74 = vector.extract_strided_slice %70 {offsets = [0, 0], sizes = [32, 32], strides = [1, 1]} : vector<32x96xf32> to vector<32x32xf32>
    %75 = vector.extract_strided_slice %74 {offsets = [0, 0], sizes = [32, 8], strides = [1, 1]} : vector<32x32xf32> to vector<32x8xf32>
    %76 = vector.extract_strided_slice %74 {offsets = [0, 8], sizes = [32, 8], strides = [1, 1]} : vector<32x32xf32> to vector<32x8xf32>
    %77 = vector.extract_strided_slice %74 {offsets = [0, 16], sizes = [32, 8], strides = [1, 1]} : vector<32x32xf32> to vector<32x8xf32>
    %78 = vector.extract_strided_slice %74 {offsets = [0, 24], sizes = [32, 8], strides = [1, 1]} : vector<32x32xf32> to vector<32x8xf32>
    %79 = vector.shape_cast %75 : vector<32x8xf32> to vector<1x32x8xf32>
    %80 = vector.shape_cast %76 : vector<32x8xf32> to vector<1x32x8xf32>
    %81 = vector.shape_cast %77 : vector<32x8xf32> to vector<1x32x8xf32>
    %82 = vector.shape_cast %78 : vector<32x8xf32> to vector<1x32x8xf32>
    %83 = tpu.concatenate %79, %80, %81, %82 in 0 : vector<1x32x8xf32>, vector<1x32x8xf32>, vector<1x32x8xf32>, vector<1x32x8xf32> -> vector<4x32x8xf32>
    %84 = vector.extract_strided_slice %73 {offsets = [0, 0], sizes = [8, 32], strides = [1, 1]} : vector<8x64xf32> to vector<8x32xf32>
    %85 = vector.extract_strided_slice %84 {offsets = [0, 0], sizes = [8, 8], strides = [1, 1]} : vector<8x32xf32> to vector<8x8xf32>
    %86 = vector.extract_strided_slice %84 {offsets = [0, 8], sizes = [8, 8], strides = [1, 1]} : vector<8x32xf32> to vector<8x8xf32>
    %87 = vector.extract_strided_slice %84 {offsets = [0, 16], sizes = [8, 8], strides = [1, 1]} : vector<8x32xf32> to vector<8x8xf32>
    %88 = vector.extract_strided_slice %84 {offsets = [0, 24], sizes = [8, 8], strides = [1, 1]} : vector<8x32xf32> to vector<8x8xf32>
    %89 = vector.shape_cast %85 : vector<8x8xf32> to vector<1x8x8xf32>
    %90 = vector.shape_cast %86 : vector<8x8xf32> to vector<1x8x8xf32>
    %91 = vector.shape_cast %87 : vector<8x8xf32> to vector<1x8x8xf32>
    %92 = vector.shape_cast %88 : vector<8x8xf32> to vector<1x8x8xf32>
    %93 = tpu.concatenate %89, %90, %91, %92 in 0 : vector<1x8x8xf32>, vector<1x8x8xf32>, vector<1x8x8xf32>, vector<1x8x8xf32> -> vector<4x8x8xf32>
    %94 = vector.extract_strided_slice %73 {offsets = [0, 32], sizes = [8, 32], strides = [1, 1]} : vector<8x64xf32> to vector<8x32xf32>
    %95 = vector.extract_strided_slice %94 {offsets = [0, 0], sizes = [8, 8], strides = [1, 1]} : vector<8x32xf32> to vector<8x8xf32>
    %96 = vector.extract_strided_slice %94 {offsets = [0, 8], sizes = [8, 8], strides = [1, 1]} : vector<8x32xf32> to vector<8x8xf32>
    %97 = vector.extract_strided_slice %94 {offsets = [0, 16], sizes = [8, 8], strides = [1, 1]} : vector<8x32xf32> to vector<8x8xf32>
    %98 = vector.extract_strided_slice %94 {offsets = [0, 24], sizes = [8, 8], strides = [1, 1]} : vector<8x32xf32> to vector<8x8xf32>
    %99 = vector.shape_cast %95 : vector<8x8xf32> to vector<1x8x8xf32>
    %100 = vector.shape_cast %96 : vector<8x8xf32> to vector<1x8x8xf32>
    %101 = vector.shape_cast %97 : vector<8x8xf32> to vector<1x8x8xf32>
    %102 = vector.shape_cast %98 : vector<8x8xf32> to vector<1x8x8xf32>
    %103 = tpu.concatenate %99, %100, %101, %102 in 0 : vector<1x8x8xf32>, vector<1x8x8xf32>, vector<1x8x8xf32>, vector<1x8x8xf32> -> vector<4x8x8xf32>
    "tpu.trace_start"() <{level = 10 : i32, message = "hqd,hkd->hqk"}> : () -> ()
    %cst_22 = arith.constant dense<0.000000e+00> : vector<4x32x8xf32>
    %104 = tpu.matmul %83, %93, %cst_22 {dimension_numbers = #tpu.dot_dimension_numbers<[2], [2], [1], [1], [0, 0, 0, 1, 1, 1], [0], [0]>} : vector<4x32x8xf32>, vector<4x8x8xf32>, vector<4x32x8xf32> -> vector<4x32x8xf32>
    "tpu.trace_stop"() : () -> ()
    %105 = vector.shape_cast %2 : vector<32x8xf32> to vector<1x32x8xf32>
    %106 = vector.broadcast %105 : vector<1x32x8xf32> to vector<4x32x8xf32>
    %107 = arith.addf %104, %106 : vector<4x32x8xf32>
    %cst_23 = arith.constant dense<0xFF800000> : vector<4x32xf32>
    %108 = vector.multi_reduction <maximumf>, %107, %cst_23 [2] : vector<4x32x8xf32> to vector<4x32xf32>
    %109 = vector.shape_cast %108 : vector<4x32xf32> to vector<4x32x1xf32>
    %110 = vector.broadcast %109 : vector<4x32x1xf32> to vector<4x32x8xf32>
    %111 = arith.subf %107, %110 : vector<4x32x8xf32>
    %112 = math.exp %111 : vector<4x32x8xf32>
    %cst_24 = arith.constant dense<0.000000e+00> : vector<4x32xf32>
    %113 = vector.multi_reduction <add>, %112, %cst_24 [2] : vector<4x32x8xf32> to vector<4x32xf32>
    %114 = vector.shape_cast %113 : vector<4x32xf32> to vector<4x32x1xf32>
    %115 = tpu.reciprocal %114 {approx = true} : vector<4x32x1xf32> -> vector<4x32x1xf32>
    %116 = vector.broadcast %115 : vector<4x32x1xf32> to vector<4x32x8xf32>
    %117 = arith.mulf %112, %116 : vector<4x32x8xf32>
    "tpu.trace_start"() <{level = 10 : i32, message = "hqk,hkd->hqd"}> : () -> ()
    %cst_25 = arith.constant dense<0.000000e+00> : vector<4x32x8xf32>
    %118 = tpu.matmul %117, %103, %cst_25 {dimension_numbers = #tpu.dot_dimension_numbers<[2], [1], [1], [2], [0, 0, 0, 1, 1, 2], [0], [0]>} : vector<4x32x8xf32>, vector<4x8x8xf32>, vector<4x32x8xf32> -> vector<4x32x8xf32>
    "tpu.trace_stop"() : () -> ()
    %119 = vector.extract_strided_slice %118 {offsets = [0, 0, 0], sizes = [1, 32, 8], strides = [1, 1, 1]} : vector<4x32x8xf32> to vector<1x32x8xf32>
    %120 = vector.shape_cast %119 : vector<1x32x8xf32> to vector<32x8xf32>
    %121 = vector.extract_strided_slice %118 {offsets = [1, 0, 0], sizes = [1, 32, 8], strides = [1, 1, 1]} : vector<4x32x8xf32> to vector<1x32x8xf32>
    %122 = vector.shape_cast %121 : vector<1x32x8xf32> to vector<32x8xf32>
    %123 = vector.extract_strided_slice %118 {offsets = [2, 0, 0], sizes = [1, 32, 8], strides = [1, 1, 1]} : vector<4x32x8xf32> to vector<1x32x8xf32>
    %124 = vector.shape_cast %123 : vector<1x32x8xf32> to vector<32x8xf32>
    %125 = vector.extract_strided_slice %118 {offsets = [3, 0, 0], sizes = [1, 32, 8], strides = [1, 1, 1]} : vector<4x32x8xf32> to vector<1x32x8xf32>
    %126 = vector.shape_cast %125 : vector<1x32x8xf32> to vector<32x8xf32>
    %127 = tpu.concatenate %120, %122, %124, %126 in 1 : vector<32x8xf32>, vector<32x8xf32>, vector<32x8xf32>, vector<32x8xf32> -> vector<32x32xf32>
    %128 = arith.addf %127, %0 : vector<32x32xf32>
    %c0_26 = arith.constant 0 : index
    %c0_27 = arith.constant 0 : index
    %129 = vector.load %arg9[%c0_26, %c0_27] : memref<4x32xf32, #tpu.memory_space<vmem>>, vector<1x32xf32>
    %c1_28 = arith.constant 1 : index
    %c0_29 = arith.constant 0 : index
    %130 = vector.load %arg9[%c1_28, %c0_29] : memref<4x32xf32, #tpu.memory_space<vmem>>, vector<1x32xf32>
    %cst_30 = arith.constant dense<0.000000e+00> : vector<32xf32>
    %131 = vector.multi_reduction <add>, %128, %cst_30 [1] : vector<32x32xf32> to vector<32xf32>
    %132 = vector.shape_cast %131 : vector<32xf32> to vector<32x1xf32>
    %cst_31 = arith.constant 3.200000e+01 : f32
    %133 = vector.broadcast %cst_31 : f32 to vector<32x1xf32>
    %134 = arith.divf %132, %133 : vector<32x1xf32>
    %135 = vector.broadcast %134 : vector<32x1xf32> to vector<32x32xf32>
    %136 = arith.subf %128, %135 : vector<32x32xf32>
    %137 = arith.mulf %136, %136 : vector<32x32xf32>
    %cst_32 = arith.constant dense<0.000000e+00> : vector<32xf32>
    %138 = vector.multi_reduction <add>, %137, %cst_32 [1] : vector<32x32xf32> to vector<32xf32>
    %139 = vector.shape_cast %138 : vector<32xf32> to vector<32x1xf32>
    %cst_33 = arith.constant 3.200000e+01 : f32
    %140 = vector.broadcast %cst_33 : f32 to vector<32x1xf32>
    %141 = arith.divf %139, %140 : vector<32x1xf32>
    %cst_34 = arith.constant 9.99999996E-13 : f32
    %142 = vector.broadcast %cst_34 : f32 to vector<32x1xf32>
    %143 = arith.addf %141, %142 : vector<32x1xf32>
    %144 = math.rsqrt %143 : vector<32x1xf32>
    %145 = vector.broadcast %144 : vector<32x1xf32> to vector<32x32xf32>
    %146 = arith.mulf %136, %145 : vector<32x32xf32>
    %147 = vector.broadcast %129 : vector<1x32xf32> to vector<32x32xf32>
    %148 = arith.mulf %146, %147 : vector<32x32xf32>
    %149 = vector.broadcast %130 : vector<1x32xf32> to vector<32x32xf32>
    %150 = arith.addf %148, %149 : vector<32x32xf32>
    %c0_35 = arith.constant 0 : index
    %c0_36 = arith.constant 0 : index
    %151 = vector.load %arg5[%c0_35, %c0_36] : memref<32x128xf32, #tpu.memory_space<vmem>>, vector<32x128xf32>
    %cst_37 = arith.constant dense<0.000000e+00> : vector<32x128xf32>
    %152 = tpu.matmul %150, %151, %cst_37 {dimension_numbers = #tpu.dot_dimension_numbers<[1], [0], [0], [1], [0, 0, 1, 1], [], []>} : vector<32x32xf32>, vector<32x128xf32>, vector<32x128xf32> -> vector<32x128xf32>
    %c0_38 = arith.constant 0 : index
    %c0_39 = arith.constant 0 : index
    %153 = vector.load %arg6[%c0_38, %c0_39] : memref<1x128xf32, #tpu.memory_space<vmem>>, vector<1x128xf32>
    %154 = vector.broadcast %153 : vector<1x128xf32> to vector<32x128xf32>
    %155 = arith.addf %152, %154 : vector<32x128xf32>
    %cst_40 = arith.constant 0.000000e+00 : f32
    %156 = vector.broadcast %cst_40 : f32 to vector<32x128xf32>
    %157 = arith.maximumf %155, %156 : vector<32x128xf32>
    %c0_41 = arith.constant 0 : index
    %c0_42 = arith.constant 0 : index
    %158 = vector.load %arg7[%c0_41, %c0_42] : memref<128x32xf32, #tpu.memory_space<vmem>>, vector<128x32xf32>
    %cst_43 = arith.constant dense<0.000000e+00> : vector<32x32xf32>
    %159 = tpu.matmul %157, %158, %cst_43 {dimension_numbers = #tpu.dot_dimension_numbers<[1], [0], [0], [1], [0, 0, 1, 1], [], []>} : vector<32x128xf32>, vector<128x32xf32>, vector<32x32xf32> -> vector<32x32xf32>
    %c0_44 = arith.constant 0 : index
    %c0_45 = arith.constant 0 : index
    %160 = vector.load %arg8[%c0_44, %c0_45] : memref<1x32xf32, #tpu.memory_space<vmem>>, vector<1x32xf32>
    %161 = vector.broadcast %160 : vector<1x32xf32> to vector<32x32xf32>
    %162 = arith.addf %159, %161 : vector<32x32xf32>
    %163 = arith.addf %162, %150 : vector<32x32xf32>
    %c2 = arith.constant 2 : index
    %c0_46 = arith.constant 0 : index
    %164 = vector.load %arg9[%c2, %c0_46] : memref<4x32xf32, #tpu.memory_space<vmem>>, vector<1x32xf32>
    %c3 = arith.constant 3 : index
    %c0_47 = arith.constant 0 : index
    %165 = vector.load %arg9[%c3, %c0_47] : memref<4x32xf32, #tpu.memory_space<vmem>>, vector<1x32xf32>
    %cst_48 = arith.constant dense<0.000000e+00> : vector<32xf32>
    %166 = vector.multi_reduction <add>, %163, %cst_48 [1] : vector<32x32xf32> to vector<32xf32>
    %167 = vector.shape_cast %166 : vector<32xf32> to vector<32x1xf32>
    %cst_49 = arith.constant 3.200000e+01 : f32
    %168 = vector.broadcast %cst_49 : f32 to vector<32x1xf32>
    %169 = arith.divf %167, %168 : vector<32x1xf32>
    %170 = vector.broadcast %169 : vector<32x1xf32> to vector<32x32xf32>
    %171 = arith.subf %163, %170 : vector<32x32xf32>
    %172 = arith.mulf %171, %171 : vector<32x32xf32>
    %cst_50 = arith.constant dense<0.000000e+00> : vector<32xf32>
    %173 = vector.multi_reduction <add>, %172, %cst_50 [1] : vector<32x32xf32> to vector<32xf32>
    %174 = vector.shape_cast %173 : vector<32xf32> to vector<32x1xf32>
    %cst_51 = arith.constant 3.200000e+01 : f32
    %175 = vector.broadcast %cst_51 : f32 to vector<32x1xf32>
    %176 = arith.divf %174, %175 : vector<32x1xf32>
    %cst_52 = arith.constant 9.99999996E-13 : f32
    %177 = vector.broadcast %cst_52 : f32 to vector<32x1xf32>
    %178 = arith.addf %176, %177 : vector<32x1xf32>
    %179 = math.rsqrt %178 : vector<32x1xf32>
    %180 = vector.broadcast %179 : vector<32x1xf32> to vector<32x32xf32>
    %181 = arith.mulf %171, %180 : vector<32x32xf32>
    %182 = vector.broadcast %164 : vector<1x32xf32> to vector<32x32xf32>
    %183 = arith.mulf %181, %182 : vector<32x32xf32>
    %184 = vector.broadcast %165 : vector<1x32xf32> to vector<32x32xf32>
    %185 = arith.addf %183, %184 : vector<32x32xf32>
    %c0_53 = arith.constant 0 : index
    %c0_54 = arith.constant 0 : index
    %186 = vector.load %arg10[%c0_53, %c0_54] : memref<32x32xf32, #tpu.memory_space<vmem>>, vector<32x32xf32>
    tpu.vector_store %arg10[%c0_53, %c0_54], %185 {strides = array<i32>} : memref<32x32xf32, #tpu.memory_space<vmem>>, vector<32x32xf32>,
    return
  }
}

</mosaic_0001>

<bundles_post_ra>
// kernel: tpu_custom_call.1
= control target key start
LH: loop header
LB: loop body
LE: loop exit
PB: predicated region body
PF: predicated region fallthrough
CT: control target
= control target key end

     0   :  { %vm59_vm0 = vcmask 261120   ;;  %s4962_s0 = inlined_call_operand.vmem [shape: f32[32,32], index: 0, kind: input, shape index: {}]   ;;  %s4963_s1 = inlined_call_operand.vmem [shape: f32[32,32], index: 1, kind: input, shape index: {}]   ;;  %s4964_s2 = inlined_call_operand.vmem [shape: f32[32,8], index: 2, kind: input, shape index: {}]   ;;  %s4965_s3 = inlined_call_operand.vmem [shape: f32[2,32,96], index: 3, kind: input, shape index: {}]   ;;  %s4966_s4 = inlined_call_operand.vmem [shape: f32[2,1,96], index: 4, kind: input, shape index: {}]   ;;  %s4967_s5 = inlined_call_operand.vmem [shape: f32[32,128], index: 5, kind: input, shape index: {}]   ;;  %s4968_s6 = inlined_call_operand.vmem [shape: f32[1,128], index: 6, kind: input, shape index: {}]   ;;  %s4969_s7 = inlined_call_operand.vmem [shape: f32[128,32], index: 7, kind: input, shape index: {}]   ;;  %s4970_s8 = inlined_call_operand.vmem [shape: f32[1,32], index: 8, kind: input, shape index: {}]   ;;  %s4971_s9 = inlined_call_operand.vmem [shape: f32[4,32], index: 9, kind: input, shape index: {}]   ;;  %s4972_s10 = inlined_call_operand.hbm [shape: f32[32,32], index: 10, kind: output, shape index: {}]  }
   0x1   :  { %v48_v0 = vld [vmem:[%s4965_s3] sm:$0xff]  ;;  %v49_v1 = vld [vmem:[%s4965_s3 + $0x8] sm:$0xff]  ;;  %v50_v2 = vld [vmem:[%s4965_s3 + $0x10] sm:$0xff] }
   0x2   :  { %v3544_v3 = vpack.c.bf16 %v49_v1, %v48_v0  ;;  %v51_v4 = vld [vmem:[%s4965_s3 + $0x18] sm:$0xff]  ;;  %v36_v5 = vld [vmem:[%s4962_s0] sm:$0xff] }
   0x3   :  { %v3548_v6 = vpack.c.bf16 %v51_v4, %v50_v2  ;;  %3296 = vmatprep.mubr.msk.f32.mxu0 %vm59_vm0, %v36_v5 }
   0x4   :  { %15 = vsyncpa [#allocation3], 0  ;;  %3545 = vmatprep.subr.bf16.mxu0 %v3544_v3  ;;  %v37_v7 = vld [vmem:[%s4962_s0 + $0x8] sm:$0xff]  ;;  %v38_v8 = vld [vmem:[%s4962_s0 + $0x10] sm:$0xff]  ;;  %vm193_vm1 = vcmask 64512   ;;  %s3944_s11 = smov 120  }
   0x5   :  { %3547 = vmatpush3.bf16.msra.mxu0 %v3544_v3  ;;  %v39_v9 = vld [vmem:[%s4962_s0 + $0x18] sm:$0xff]  ;;  %v3031_v10 = vld [vmem:[%s4966_s4] ss:$0 sm:$0xff]  ;;  %s3945_s12 = smov 112   ;;  %s3946_s13 = smov 104   ;;  %vm4119_vm2 = vmpackc.low %vm193_vm1, %vm193_vm1  ;;  %vm1286_vm3 = vcmask 130048  }
   0x6   :  { %3549 = vmatprep.subr.bf16.mxu0 %v3548_v6  ;;  %s3947_s14 = smov 96   ;;  %s3948_s15 = smov 64   ;;  %vm1291_vm4 = vcmask 195584   ;;  %vm1418_vm5 = vcmask 781568   ;;  %vm1556_vm6 = vcmask 1041409   ;;  %vm1559_vm7 = vcmask 1042434  }
   0x7   :  { %s3950_s17 = smov 16   ;;  %vm1562_vm8 = vcmask 1043459   ;;  %vm1565_vm9 = vcmask 1044484   ;;  %vm1568_vm10 = vcmask 1045509   ;;  %vm1571_vm11 = vcmask 1046534   ;;  %s3952_s28 = smov [#allocation2]  }
   0x8   :  { %vm1574_vm12 = vcmask 1047559  }
   0x9   :  { %3551 = vmatpush3.bf16.msra.mxu0 %v3548_v6 }
   0xc   :  { %3297 = vmatmul.mubr.msk.f32.vlgmr.msra.gmra.mrb[0].mxu0 %vm59_vm0, %v37_v7 }
   0xd   :  { %3299 = vmatprep.mubr.msk.f32.mxu0 %vm59_vm0, %v38_v8 }
  0x10   :  { %3300 = vmatmul.mubr.msk.f32.gmra.mrb[2].mxu0 %vm59_vm0, %v39_v9 }
  0xdf   :  { %v3298_v11 = vpop.f32.mrb[0].mxu0 }
  0xe0   :  { %v138_v12 = vpop.f32.mrb[1].mxu0  ;;  %v4044_v17 = vadd.f32 %v3298_v11, %v3031_v10 }
  0xe1   :  { %v139_v13 = vadd.f32 %v3031_v10, %v138_v12 }
  0xe3   :  { %v3301_v14 = vpop.f32.mrb[2].mxu0  ;;  %161 = vrot.lane.b32.xlu0 %v139_v13, %s3944_s11  ;;  %3310 = vmatprep.mubr.msk.f32.mxu0 %vm193_vm1, %v139_v13  ;;  %v3692_v19 = vpack.i.bf16 %v4044_v17, %v139_v13 }
  0xe4   :  { %v4042_v15 = vadd.f32 %v3301_v14, %v3031_v10  ;;  %v148_v16 = vpop.f32.mrb[3].mxu0 }
  0xe5   :  { %v149_v18 = vadd.f32 %v3031_v10, %v148_v16 }
  0xe6   :  { %167 = vrot.lane.b32.xlu1 %v4042_v15, %s3944_s11 }
  0xe7   :  { %163 = vrot.lane.b32.xlu0 %v4044_v17, %s3944_s11  ;;  %v3697_v20 = vpack.i.bf16 %v4042_v15, %v149_v18 }
  0xea   :  { %165 = vrot.lane.b32.xlu1 %v149_v18, %s3944_s11 }
  0xeb   :  { %169 = vrot.lane.b32.xlu0 %v139_v13, %s3945_s12 }
  0xee   :  { %171 = vrot.lane.b32.xlu1 %v4044_v17, %s3945_s12 }
  0xef   :  { %177 = vrot.lane.b32.xlu0 %v139_v13, %s3946_s13 }
  0xf2   :  { %179 = vrot.lane.b32.xlu1 %v4044_v17, %s3946_s13 }
  0xf3   :  { %173 = vrot.lane.b32.xlu0 %v149_v18, %s3945_s12 }
  0xf6   :  { %175 = vrot.lane.b32.xlu1 %v4042_v15, %s3945_s12 }
  0xf7   :  { %181 = vrot.lane.b32.xlu0 %v149_v18, %s3946_s13 }
  0xfa   :  { %183 = vrot.lane.b32.xlu1 %v4042_v15, %s3946_s13 }
  0xfb   :  { %3693 = vrot.lane.b32.xlu0 %v3692_v19, %s3947_s14 }
  0xfe   :  { %3698 = vrot.lane.b32.xlu1 %v3697_v20, %s3947_s14 }
 0x155   :  { %v162_v21 = vpop.permute.xlu0 %161 }
 0x158   :  { %v4067_v22 = vpop.permute.xlu1 %167 }
 0x159   :  { %v4069_v23 = vpop.permute.xlu0 %163 }
 0x15a   :  { %v3702_v24 = vpack.i.bf16 %v4069_v23, %v162_v21 }
 0x15c   :  { %v4072_v25 = vpop.permute.xlu1 %165  ;;  %3703 = vrot.lane.b32.xlu0 %v3702_v24, %s3947_s14 }
 0x15d   :  { %v170_v26 = vpop.permute.xlu0 %169  ;;  %v3707_v27 = vpack.i.bf16 %v4067_v22, %v4072_v25 }
 0x15e   :  { %3338 = vmatprep.mubr.msk.f32.mxu1 %vm193_vm1, %v170_v26 }
 0x15f   :  { %3708 = vrot.lane.b32.xlu1 %v3707_v27, %s3947_s14 }
 0x160   :  { %v4079_v28 = vpop.permute.xlu1 %171 }
 0x161   :  { %v4081_v29 = vpop.permute.xlu0 %177  ;;  %v4084_v30 = vpack.i.bf16 %v4079_v28, %v170_v26 }
 0x163   :  { %3713 = vrot.lane.b32.xlu0 %v4084_v30, %s3947_s14 }
 0x164   :  { %v4088_v31 = vpop.permute.xlu1 %179 }
 0x165   :  { %v4090_v32 = vpop.permute.xlu0 %173  ;;  %v4094_v33 = vpack.i.bf16 %v4088_v31, %v4081_v29 }
 0x167   :  { %3718 = vrot.lane.b32.xlu1 %v4094_v33, %s3947_s14 }
 0x168   :  { %v4098_v34 = vpop.permute.xlu1 %175 }
 0x169   :  { %v4100_v35 = vpop.permute.xlu0 %181  ;;  %v4104_v36 = vpack.i.bf16 %v4098_v34, %v4090_v32 }
 0x16b   :  { %3723 = vrot.lane.b32.xlu0 %v4104_v36, %s3947_s14 }
 0x16c   :  { %v4108_v37 = vpop.permute.xlu1 %183 }
 0x16d   :  { %v3694_v38 = vpop.permute.xlu0 %3693  ;;  %v4112_v39 = vpack.i.bf16 %v4108_v37, %v4100_v35 }
 0x16e   :  { %v3696_v40 = vunpack.i.h.bf16 %v3694_v38  ;;  %v3695_v41 = vunpack.i.l.bf16 %v3694_v38 }
 0x16f   :  { %3738 = vrot.lane.b32.xlu0 %v3702_v24, %s3948_s15  ;;  %3728 = vrot.lane.b32.xlu1 %v4112_v39, %s3947_s14  ;;  %v41_v24 = vld [vmem:[%s4963_s1 + $0x8] sm:$0xff] }
 0x170   :  { %v3552_v43 = vpack.c.bf16 %v3696_v40, %v3695_v41  ;;  %v3699_v44 = vpop.permute.xlu1 %3698 }
 0x171   :  { %v3701_v45 = vunpack.i.h.bf16 %v3699_v44  ;;  %v3700_v46 = vunpack.i.l.bf16 %v3699_v44 }
 0x172   :  { %3554 = vmatprep.subr.msk.bf16.mxu0 %vm4119_vm2, %v3552_v43 }
 0x173   :  { %v3558_v47 = vpack.c.bf16 %v3701_v45, %v3700_v46  ;;  %3733 = vrot.lane.b32.xlu1 %v3692_v19, %s3948_s15  ;;  %3557 = vmatpush3.bf16.xpose.msk.msra.mxu0 %vm4119_vm2, %v3552_v43 }
 0x175   :  { %3560 = vmatprep.subr.msk.bf16.mxu0 %vm4119_vm2, %v3558_v47 }
 0x177   :  { %3743 = vrot.lane.b32.xlu1 %v3697_v20, %s3948_s15 }
 0x17b   :  { %3748 = vrot.lane.b32.xlu1 %v3707_v27, %s3948_s15  ;;  %3563 = vmatpush3.bf16.xpose.msk.msra.mxu0 %vm4119_vm2, %v3558_v47 }
 0x182   :  { %3311 = vmatmul.mubr.msk.f32.vlgmr.msra.gmra.mrb[4].mxu0 %vm193_vm1, %v4044_v17 }
 0x183   :  { %3313 = vmatprep.mubr.msk.f32.mxu0 %vm193_vm1, %v149_v18 }
 0x186   :  { %3314 = vmatmul.mubr.msk.f32.gmra.mrb[6].mxu0 %vm193_vm1, %v4042_v15 }
 0x187   :  { %3324 = vmatprep.mubr.msk.f32.mxu0 %vm193_vm1, %v162_v21 }
 0x1ce   :  { %v3704_v48 = vpop.permute.xlu0 %3703 }
 0x1cf   :  { %v3706_v49 = vunpack.i.h.bf16 %v3704_v48  ;;  %v3705_v50 = vunpack.i.l.bf16 %v3704_v48 }
 0x1d1   :  { %v3564_v51 = vpack.c.bf16 %v3706_v49, %v3705_v50  ;;  %v3709_v52 = vpop.permute.xlu1 %3708 }
 0x1d2   :  { %v3711_v53 = vunpack.i.h.bf16 %v3709_v52  ;;  %v3710_v54 = vunpack.i.l.bf16 %v3709_v52 }
 0x1d3   :  { %3566 = vmatprep.subr.msk.bf16.mxu0 %vm4119_vm2, %v3564_v51 }
 0x1d4   :  { %v3570_v55 = vpack.c.bf16 %v3711_v53, %v3710_v54  ;;  %3569 = vmatpush3.bf16.xpose.msk.msra.mxu0 %vm4119_vm2, %v3564_v51 }
 0x1d5   :  { %v3714_v56 = vpop.permute.xlu0 %3713 }
 0x1d6   :  { %3572 = vmatprep.subr.msk.bf16.mxu0 %vm4119_vm2, %v3570_v55  ;;  %v3716_v57 = vunpack.i.h.bf16 %v3714_v56  ;;  %v3715_v58 = vunpack.i.l.bf16 %v3714_v56 }
 0x1d8   :  { %v3576_v59 = vpack.c.bf16 %v3716_v57, %v3715_v58 }
 0x1d9   :  { %v3719_v60 = vpop.permute.xlu1 %3718 }
 0x1da   :  { %v3721_v61 = vunpack.i.h.bf16 %v3719_v60  ;;  %v3720_v62 = vunpack.i.l.bf16 %v3719_v60  ;;  %3578 = vmatprep.subr.msk.bf16.mxu1 %vm4119_vm2, %v3576_v59 }
 0x1db   :  { %3581 = vmatpush3.bf16.xpose.msk.msra.mxu1 %vm4119_vm2, %v3576_v59 }
 0x1dc   :  { %v3588_v63 = vpack.c.bf16 %v3721_v61, %v3720_v62  ;;  %3575 = vmatpush3.bf16.xpose.msk.msra.mxu0 %vm4119_vm2, %v3570_v55 }
 0x1dd   :  { %v3724_v0 = vpop.permute.xlu0 %3723 }
 0x1de   :  { %v3726_v1 = vunpack.i.h.bf16 %v3724_v0  ;;  %v3725_v2 = vunpack.i.l.bf16 %v3724_v0  ;;  %3590 = vmatprep.subr.msk.bf16.mxu0 %vm4119_vm2, %v3588_v63 }
 0x1e0   :  { %v3582_v3 = vpack.c.bf16 %v3726_v1, %v3725_v2 }
 0x1e1   :  { %v3729_v4 = vpop.permute.xlu1 %3728  ;;  %v3739_v8 = vpop.permute.xlu0 %3738 }
 0x1e2   :  { %v3731_v5 = vunpack.i.h.bf16 %v3729_v4  ;;  %v3730_v6 = vunpack.i.l.bf16 %v3729_v4  ;;  %3584 = vmatprep.subr.msk.bf16.mxu1 %vm4119_vm2, %v3582_v3  ;;  %v3741_v12 = vunpack.i.h.bf16 %v3739_v8  ;;  %v3740_v13 = vunpack.i.l.bf16 %v3739_v8 }
 0x1e3   :  { %3325 = vmatmul.mubr.msk.f32.vlgmr.msra.gmra.mrb[8].mxu0 %vm193_vm1, %v4069_v23  ;;  %3587 = vmatpush3.bf16.xpose.msk.msra.mxu1 %vm4119_vm2, %v3582_v3 }
 0x1e4   :  { %v3594_v7 = vpack.c.bf16 %v3731_v5, %v3730_v6  ;;  %3327 = vmatprep.mubr.msk.f32.mxu0 %vm193_vm1, %v4072_v25  ;;  %3593 = vmatpush3.bf16.xpose.msk.msra.mxu0 %vm4119_vm2, %v3588_v63  ;;  %v3608_v18 = vpack.c.bf16 %v3741_v12, %v3740_v13  ;;  %v40_v25 = vld [vmem:[%s4963_s1] sm:$0xff] }
 0x1e5   :  { %v3734_v9 = vpop.permute.xlu1 %3733 }
 0x1e6   :  { %v3736_v10 = vunpack.i.h.bf16 %v3734_v9  ;;  %v3735_v11 = vunpack.i.l.bf16 %v3734_v9  ;;  %3596 = vmatprep.subr.msk.bf16.mxu0 %vm4119_vm2, %v3594_v7 }
 0x1e7   :  { %3328 = vmatmul.mubr.msk.f32.gmra.mrb[10].mxu0 %vm193_vm1, %v4067_v22 }
 0x1e8   :  { %3352 = vmatprep.mubr.msk.f32.mxu0 %vm193_vm1, %v4081_v29  ;;  %v3600_v14 = vpack.c.bf16 %v3736_v10, %v3735_v11 }
 0x1e9   :  { %v3744_v15 = vpop.permute.xlu1 %3743 }
 0x1ea   :  { %v3746_v16 = vunpack.i.h.bf16 %v3744_v15  ;;  %v3745_v17 = vunpack.i.l.bf16 %v3744_v15  ;;  %3339 = vmatmul.mubr.msk.f32.vlgmr.msra.gmra.mrb[0].mxu1 %vm193_vm1, %v4079_v28  ;;  %3601 = vmatprep.subr.bf16.mxu1 %v3600_v14 }
 0x1eb   :  { %3341 = vmatprep.mubr.msk.f32.mxu1 %vm193_vm1, %v4090_v32  ;;  %3603 = vmatpush3.bf16.msra.mxu1 %v3600_v14 }
 0x1ec   :  { %3599 = vmatpush3.bf16.xpose.msk.msra.mxu0 %vm4119_vm2, %v3594_v7  ;;  %v3604_v19 = vpack.c.bf16 %v3746_v16, %v3745_v17 }
 0x1ed   :  { %v3749_v20 = vpop.permute.xlu1 %3748  ;;  %3609 = vmatprep.subr.bf16.mxu0 %v3608_v18 }
 0x1ee   :  { %3342 = vmatmul.mubr.msk.f32.gmra.mrb[2].mxu1 %vm193_vm1, %v4098_v34  ;;  %3605 = vmatprep.subr.bf16.mxu1 %v3604_v19  ;;  %v3751_v21 = vunpack.i.h.bf16 %v3749_v20  ;;  %v3750_v22 = vunpack.i.l.bf16 %v3749_v20  ;;  %v42_v34 = vld [vmem:[%s4963_s1 + $0x10] sm:$0xff] }
 0x1ef   :  { %3607 = vmatpush3.bf16.msra.mxu1 %v3604_v19 }
 0x1f0   :  { %v3612_v23 = vpack.c.bf16 %v3751_v21, %v3750_v22 }
 0x1f3   :  { %3353 = vmatmul.mubr.msk.f32.vlgmr.msra.gmra.mrb[12].mxu0 %vm193_vm1, %v4088_v31  ;;  %v43_v31 = vld [vmem:[%s4963_s1 + $0x18] sm:$0xff]  ;;  %s3949_s1 = smov 8  }
 0x1f4   :  { %3355 = vmatprep.mubr.msk.f32.mxu0 %vm193_vm1, %v4100_v35  ;;  %3611 = vmatpush3.bf16.msra.mxu0 %v3608_v18 }
 0x1f5   :  { %3613 = vmatprep.subr.bf16.mxu0 %v3612_v23 }
 0x1f7   :  { %3356 = vmatmul.mubr.msk.f32.gmra.mrb[14].mxu0 %vm193_vm1, %v4108_v37 }
 0x1f8   :  { %3615 = vmatpush3.bf16.msra.mxu0 %v3612_v23 }
 0x255   :  { %v3312_v26 = vpop.f32.mrb[4].mxu0 }
 0x256   :  { %v4190_v27 = vadd.f32 %v3312_v26, %v41_v24  ;;  %v276_v28 = vpop.f32.mrb[5].mxu0 }
 0x257   :  { %v4192_v29 = vadd.f32 %v276_v28, %v40_v25 }
 0x258   :  { %v625_v32 = vsel %vm59_vm0, %v4190_v27, -inf }
 0x259   :  { %626 = vmax.xlane.f32.xlu1 %v625_v32  ;;  %v3315_v35 = vpop.f32.mrb[6].mxu0  ;;  %v622_v37 = vsel %vm59_vm0, %v4192_v29, -inf }
 0x25a   :  { %v4204_v38 = vadd.f32 %v3315_v35, %v43_v31  ;;  %v286_v40 = vpop.f32.mrb[7].mxu0  ;;  %623 = vmax.xlane.f32.xlu0 %v622_v37 }
 0x25b   :  { %v4206_v41 = vadd.f32 %v286_v40, %v42_v34 }
 0x25c   :  { %v631_v42 = vsel %vm59_vm0, %v4204_v38, -inf }
 0x25d   :  { %v628_v43 = vsel %vm59_vm0, %v4206_v41, -inf }
 0x25e   :  { %629 = vmax.xlane.f32.xlu1 %v628_v43  ;;  %632 = vmax.xlane.f32.xlu0 %v631_v42 }
 0x2b6   :  { %v3326_v44 = vpop.f32.mrb[8].mxu0 }
 0x2b7   :  { %v4212_v45 = vadd.f32 %v3326_v44, %v41_v24  ;;  %v385_v46 = vpop.f32.mrb[9].mxu0 }
 0x2b8   :  { %v4220_v54 = vadd.f32 %v385_v46, %v40_v25 }
 0x2b9   :  { %v637_v47 = vsel %vm59_vm0, %v4212_v45, -inf }
 0x2ba   :  { %v3329_v48 = vpop.f32.mrb[10].mxu0  ;;  %638 = vmax.xlane.f32.xlu0 %v637_v47  ;;  %v634_v61 = vsel %vm59_vm0, %v4220_v54, -inf }
 0x2bb   :  { %v395_v49 = vpop.f32.mrb[11].mxu0  ;;  %v4228_v60 = vadd.f32 %v3329_v48, %v43_v31 }
 0x2bc   :  { %v4224_v56 = vadd.f32 %v395_v49, %v42_v34 }
 0x2bd   :  { %v3340_v50 = vpop.f32.mrb[0].mxu1  ;;  %v643_v3 = vsel %vm59_vm0, %v4228_v60, -inf }
 0x2be   :  { %v4216_v51 = vadd.f32 %v3340_v50, %v41_v24  ;;  %v494_v52 = vpop.f32.mrb[1].mxu1  ;;  %v640_v63 = vsel %vm59_vm0, %v4224_v56, -inf }
 0x2bf   :  { %v4218_v53 = vadd.f32 %v494_v52, %v40_v25 }
 0x2c0   :  { %v649_v55 = vsel %vm59_vm0, %v4216_v51, -inf }
 0x2c1   :  { %v3343_v57 = vpop.f32.mrb[2].mxu1  ;;  %650 = vmax.xlane.f32.xlu0 %v649_v55  ;;  %v646_v58 = vsel %vm59_vm0, %v4218_v53, -inf }
 0x2c2   :  { %v504_v59 = vpop.f32.mrb[3].mxu1  ;;  %647 = vmax.xlane.f32.xlu1 %v646_v58  ;;  %v4236_v2 = vadd.f32 %v3343_v57, %v43_v31 }
 0x2c3   :  { %v4232_v62 = vadd.f32 %v504_v59, %v42_v34 }
 0x2c4   :  { %v655_v9 = vsel %vm59_vm0, %v4236_v2, -inf }
 0x2c5   :  { %635 = vmax.xlane.f32.xlu0 %v634_v61  ;;  %v652_v5 = vsel %vm59_vm0, %v4232_v62, -inf }
 0x2c6   :  { %v3354_v0 = vpop.f32.mrb[12].mxu0  ;;  %641 = vmax.xlane.f32.xlu1 %v640_v63 }
 0x2c7   :  { %v603_v1 = vpop.f32.mrb[13].mxu0  ;;  %v4244_v8 = vadd.f32 %v3354_v0, %v41_v24 }
 0x2c8   :  { %v4240_v4 = vadd.f32 %v603_v1, %v40_v25 }
 0x2c9   :  { %644 = vmax.xlane.f32.xlu0 %v643_v3  ;;  %v661_v13 = vsel %vm59_vm0, %v4244_v8, -inf }
 0x2ca   :  { %v3357_v6 = vpop.f32.mrb[14].mxu0  ;;  %653 = vmax.xlane.f32.xlu1 %v652_v5  ;;  %v658_v11 = vsel %vm59_vm0, %v4240_v4, -inf }
 0x2cb   :  { %v613_v7 = vpop.f32.mrb[15].mxu0  ;;  %v4252_v12 = vadd.f32 %v3357_v6, %v43_v31 }
 0x2cc   :  { %v4248_v10 = vadd.f32 %v613_v7, %v42_v34 }
 0x2cd   :  { %656 = vmax.xlane.f32.xlu0 %v655_v9  ;;  %v667_v15 = vsel %vm59_vm0, %v4252_v12, -inf }
 0x2ce   :  { %659 = vmax.xlane.f32.xlu1 %v658_v11  ;;  %v664_v14 = vsel %vm59_vm0, %v4248_v10, -inf }
 0x2d1   :  { %662 = vmax.xlane.f32.xlu0 %v661_v13 }
 0x2d2   :  { %665 = vmax.xlane.f32.xlu1 %v664_v14 }
 0x2d5   :  { %668 = vmax.xlane.f32.xlu0 %v667_v15 }
 0x2e3   :  { %3758 = vrot.lane.b32.xlu1 %v4094_v33, %s3948_s15 }
 0x2e6   :  { %v627_v16 = vpop.xlane.xlu1 %626 }
 0x2e7   :  { %v624_v17 = vpop.xlane.xlu0 %623  ;;  %v671_v20 = vsub.f32 %v4190_v27, %v627_v16 }
 0x2e8   :  { %v670_v18 = vsub.f32 %v4192_v29, %v624_v17 }
 0x2e9   :  { %v688_v24 = vmul.f32 1.442695, %v671_v20 }
 0x2ea   :  { %v686_v21 = vmul.f32 1.442695, %v670_v18 }
 0x2eb   :  { %3753 = vrot.lane.b32.xlu0 %v4084_v30, %s3948_s15  ;;  %v630_v19 = vpop.xlane.xlu1 %629  ;;  %v633_v23 = vpop.xlane.xlu0 %632 }
 0x2ec   :  { %v672_v22 = vsub.f32 %v4206_v41, %v630_v19  ;;  %v673_v25 = vsub.f32 %v4204_v38, %v633_v23  ;;  %3772 = vpow2.f32 %v686_v21 }
 0x2ed   :  { %3774 = vpow2.f32 %v688_v24 }
 0x2ee   :  { %v690_v26 = vmul.f32 1.442695, %v672_v22  ;;  %v692_v33 = vmul.f32 1.442695, %v673_v25 }
 0x2f0   :  { %3776 = vpow2.f32 %v690_v26 }
 0x2f1   :  { %3778 = vpow2.f32 %v692_v33 }
 0x2f6   :  { %v4268_v30 = vpop.eup %3772 }
 0x2f7   :  { %v4270_v28 = vpop.eup %3774  ;;  %v718_v27 = vsel %vm59_vm0, %v4268_v30, 0.0 }
 0x2f8   :  { %v721_v31 = vsel %vm59_vm0, %v4270_v28, 0.0 }
 0x2fa   :  { %v4274_v29 = vpop.eup %3776 }
 0x2fb   :  { %v4278_v32 = vpop.eup %3778  ;;  %v724_v34 = vsel %vm59_vm0, %v4274_v29, 0.0 }
 0x2fc   :  { %v727_v35 = vsel %vm59_vm0, %v4278_v32, 0.0 }
 0x307   :  { %719 = vadd.xlane.f32.xlu1 %v718_v27 }
 0x30a   :  { %722 = vadd.xlane.f32.xlu0 %v721_v31 }
 0x30b   :  { %725 = vadd.xlane.f32.xlu1 %v724_v34 }
 0x30e   :  { %728 = vadd.xlane.f32.xlu0 %v727_v35 }
 0x347   :  { %v639_v37 = vpop.xlane.xlu0 %638 }
 0x348   :  { %v675_v38 = vsub.f32 %v4212_v45, %v639_v37 }
 0x34a   :  { %v696_v40 = vmul.f32 1.442695, %v675_v38 }
 0x34c   :  { %3780 = vpow2.f32 %v696_v40 }
 0x34e   :  { %v651_v41 = vpop.xlane.xlu0 %650 }
 0x34f   :  { %v679_v42 = vsub.f32 %v4216_v51, %v651_v41  ;;  %v648_v43 = vpop.xlane.xlu1 %647 }
 0x350   :  { %v678_v46 = vsub.f32 %v4218_v53, %v648_v43 }
 0x351   :  { %v704_v44 = vmul.f32 1.442695, %v679_v42 }
 0x352   :  { %v636_v47 = vpop.xlane.xlu0 %635  ;;  %v702_v50 = vmul.f32 1.442695, %v678_v46 }
 0x353   :  { %3782 = vpow2.f32 %v704_v44  ;;  %v674_v48 = vsub.f32 %v4220_v54, %v636_v47  ;;  %v642_v49 = vpop.xlane.xlu1 %641 }
 0x354   :  { %v676_v55 = vsub.f32 %v4224_v56, %v642_v49 }
 0x355   :  { %v694_v52 = vmul.f32 1.442695, %v674_v48 }
 0x356   :  { %v4289_v57 = vpop.eup %3780  ;;  %v645_v45 = vpop.xlane.xlu0 %644  ;;  %v698_v53 = vmul.f32 1.442695, %v676_v55 }
 0x357   :  { %3784 = vpow2.f32 %v694_v52  ;;  %v677_v58 = vsub.f32 %v4228_v60, %v645_v45  ;;  %v654_v51 = vpop.xlane.xlu1 %653  ;;  %v733_v59 = vsel %vm59_vm0, %v4289_v57, 0.0 }
 0x358   :  { %734 = vadd.xlane.f32.xlu0 %v733_v59  ;;  %3786 = vpow2.f32 %v702_v50  ;;  %v680_v54 = vsub.f32 %v4232_v62, %v654_v51 }
 0x359   :  { %v700_v61 = vmul.f32 1.442695, %v677_v58 }
 0x35a   :  { %v657_v63 = vpop.xlane.xlu0 %656  ;;  %v706_v3 = vmul.f32 1.442695, %v680_v54 }
 0x35b   :  { %3788 = vpow2.f32 %v700_v61  ;;  %v681_v56 = vsub.f32 %v4236_v2, %v657_v63  ;;  %v660_v0 = vpop.xlane.xlu1 %659 }
 0x35c   :  { %3790 = vpow2.f32 %v698_v53  ;;  %v682_v5 = vsub.f32 %v4240_v4, %v660_v0 }
 0x35d   :  { %v4296_v1 = vpop.eup %3782  ;;  %v708_v60 = vmul.f32 1.442695, %v681_v56 }
 0x35e   :  { %v663_v6 = vpop.xlane.xlu0 %662  ;;  %v745_v7 = vsel %vm59_vm0, %v4296_v1, 0.0  ;;  %v710_v2 = vmul.f32 1.442695, %v682_v5 }
 0x35f   :  { %3792 = vpow2.f32 %v708_v60  ;;  %v683_v9 = vsub.f32 %v4244_v8, %v663_v6  ;;  %v666_v62 = vpop.xlane.xlu1 %665  ;;  %746 = vadd.xlane.f32.xlu0 %v745_v7 }
 0x360   :  { %3794 = vpow2.f32 %v706_v3  ;;  %v684_v14 = vsub.f32 %v4248_v10, %v666_v62 }
 0x361   :  { %v4302_v11 = vpop.eup %3784  ;;  %v712_v13 = vmul.f32 1.442695, %v683_v9 }
 0x362   :  { %v669_v15 = vpop.xlane.xlu0 %668  ;;  %v730_v4 = vsel %vm59_vm0, %v4302_v11, 0.0  ;;  %v4307_v16 = vpop.eup %3786  ;;  %v714_v21 = vmul.f32 1.442695, %v684_v14 }
 0x363   :  { %3796 = vpow2.f32 %v712_v13  ;;  %v685_v17 = vsub.f32 %v4252_v12, %v669_v15  ;;  %v3759_v18 = vpop.permute.xlu1 %3758  ;;  %731 = vadd.xlane.f32.xlu1 %v730_v4  ;;  %v742_v10 = vsel %vm59_vm0, %v4307_v16, 0.0 }
 0x364   :  { %v3761_v8 = vunpack.i.h.bf16 %v3759_v18  ;;  %v3760_v19 = vunpack.i.l.bf16 %v3759_v18  ;;  %3798 = vpow2.f32 %v710_v2 }
 0x365   :  { %v4310_v20 = vpop.eup %3788  ;;  %v716_v22 = vmul.f32 1.442695, %v685_v17 }
 0x366   :  { %v3754_v23 = vpop.permute.xlu0 %3753  ;;  %v739_v24 = vsel %vm59_vm0, %v4310_v20, 0.0  ;;  %v4316_v25 = vpack.c.bf16 %v3761_v8, %v3760_v19  ;;  %v4318_v26 = vpop.eup %3790 }
 0x367   :  { %3800 = vpow2.f32 %v716_v22  ;;  %v3756_v12 = vunpack.i.h.bf16 %v3754_v23  ;;  %v3755_v33 = vunpack.i.l.bf16 %v3754_v23  ;;  %743 = vadd.xlane.f32.xlu1 %v742_v10  ;;  %740 = vadd.xlane.f32.xlu0 %v739_v24  ;;  %v736_v34 = vsel %vm59_vm0, %v4318_v26, 0.0 }
 0x368   :  { %3625 = vmatprep.subr.bf16.mxu0 %v4316_v25  ;;  %3802 = vpow2.f32 %v714_v21 }
 0x369   :  { %v4321_v27 = vpop.eup %3792  ;;  %v3616_v31 = vpack.c.bf16 %v3756_v12, %v3755_v33 }
 0x36a   :  { %v751_v35 = vsel %vm59_vm0, %v4321_v27, 0.0  ;;  %v4327_v37 = vpop.eup %3794 }
 0x36b   :  { %737 = vadd.xlane.f32.xlu1 %v736_v34  ;;  %752 = vadd.xlane.f32.xlu0 %v751_v35  ;;  %v748_v40 = vsel %vm59_vm0, %v4327_v37, 0.0 }
 0x36c   :  { %3617 = vmatprep.subr.bf16.mxu1 %v3616_v31 }
 0x36d   :  { %v4329_v38 = vpop.eup %3796 }
 0x36e   :  { %v757_v41 = vsel %vm59_vm0, %v4329_v38, 0.0  ;;  %v4335_v42 = vpop.eup %3798 }
 0x36f   :  { %749 = vadd.xlane.f32.xlu1 %v748_v40  ;;  %758 = vadd.xlane.f32.xlu0 %v757_v41  ;;  %v754_v44 = vsel %vm59_vm0, %v4335_v42, 0.0 }
 0x371   :  { %v4337_v43 = vpop.eup %3800 }
 0x372   :  { %v763_v46 = vsel %vm59_vm0, %v4337_v43, 0.0  ;;  %v4343_v47 = vpop.eup %3802 }
 0x373   :  { %755 = vadd.xlane.f32.xlu1 %v754_v44  ;;  %764 = vadd.xlane.f32.xlu0 %v763_v46  ;;  %v760_v48 = vsel %vm59_vm0, %v4343_v47, 0.0 }
 0x377   :  { %761 = vadd.xlane.f32.xlu1 %v760_v48 }
 0x388   :  { %3768 = vrot.lane.b32.xlu1 %v4112_v39, %s3948_s15 }
 0x389   :  { %3763 = vrot.lane.b32.xlu0 %v4104_v36, %s3948_s15 }
 0x394   :  { %v720_v49 = vpop.xlane.xlu1 %719 }
 0x395   :  { %3804 = vrcp.f32 %v720_v49 }
 0x397   :  { %v723_v50 = vpop.xlane.xlu0 %722 }
 0x398   :  { %3806 = vrcp.f32 %v723_v50  ;;  %v726_v52 = vpop.xlane.xlu1 %725 }
 0x399   :  { %3808 = vrcp.f32 %v726_v52 }
 0x39b   :  { %v729_v55 = vpop.xlane.xlu0 %728 }
 0x39c   :  { %3810 = vrcp.f32 %v729_v55  ;;  %v3086_v55 = vld [vmem:[%s4965_s3 + $0x30] sm:$0xff] }
 0x39f   :  { %v3805_v45 = vpop.eup %3804 }
 0x3a0   :  { %v782_v58 = vmul.f32 %v3805_v45, %v4268_v30  ;;  %v3087_v45 = vld [vmem:[%s4965_s3 + $0x38] sm:$0xff] }
 0x3a2   :  { %v3807_v51 = vpop.eup %3806  ;;  %3366 = vmatprep.mubr.msk.f32.mxu1 %vm59_vm0, %v782_v58  ;;  %v3636_v58 = vpack.c.bf16 %v3087_v45, %v3086_v55 }
 0x3a3   :  { %v3809_v59 = vpop.eup %3808  ;;  %v783_v39 = vmul.f32 %v3807_v51, %v4270_v28 }
 0x3a4   :  { %v784_v53 = vmul.f32 %v3809_v59, %v4274_v29 }
 0x3a5   :  { %3367 = vmatmul.mubr.msk.f32.vlgmr.msra.gmra.mrb[4].mxu1 %vm59_vm0, %v783_v39 }
 0x3a6   :  { %v3811_v36 = vpop.eup %3810  ;;  %3619 = vmatpush3.bf16.msra.mxu1 %v3616_v31  ;;  %3369 = vmatprep.mubr.msk.f32.mxu1 %vm59_vm0, %v784_v53 }
 0x3a7   :  { %v785_v61 = vmul.f32 %v3811_v36, %v4278_v32 }
 0x3a9   :  { %3370 = vmatmul.mubr.msk.f32.gmra.mrb[6].mxu1 %vm59_vm0, %v785_v61 }
 0x3e5   :  { %v735_v54 = vpop.xlane.xlu0 %734 }
 0x3e6   :  { %3812 = vrcp.f32 %v735_v54 }
 0x3ec   :  { %v747_v30 = vpop.xlane.xlu0 %746 }
 0x3f0   :  { %v732_v63 = vpop.xlane.xlu1 %731  ;;  %v3813_v3 = vpop.eup %3812 }
 0x3f1   :  { %3814 = vrcp.f32 %v732_v63  ;;  %v787_v7 = vmul.f32 %v3813_v3, %v4289_v57 }
 0x3f4   :  { %v744_v56 = vpop.xlane.xlu1 %743  ;;  %v741_v0 = vpop.xlane.xlu0 %740 }
 0x3f5   :  { %3816 = vrcp.f32 %v744_v56 }
 0x3f6   :  { %3818 = vrcp.f32 %v741_v0 }
 0x3f8   :  { %v738_v28 = vpop.xlane.xlu1 %737  ;;  %v753_v29 = vpop.xlane.xlu0 %752 }
 0x3f9   :  { %3820 = vrcp.f32 %v738_v28 }
 0x3fa   :  { %3822 = vrcp.f32 %v747_v30 }
 0x3fb   :  { %v3815_v60 = vpop.eup %3814 }
 0x3fc   :  { %v750_v5 = vpop.xlane.xlu1 %749  ;;  %v759_v6 = vpop.xlane.xlu0 %758  ;;  %v786_v32 = vmul.f32 %v3815_v60, %v4302_v11 }
 0x3fd   :  { %3824 = vrcp.f32 %v750_v5 }
 0x3fe   :  { %3380 = vmatprep.mubr.msk.f32.mxu0 %vm59_vm0, %v786_v32  ;;  %3826 = vrcp.f32 %v753_v29 }
 0x3ff   :  { %v3817_v9 = vpop.eup %3816  ;;  %3381 = vmatmul.mubr.msk.f32.vlgmr.msra.gmra.mrb[16].mxu0 %vm59_vm0, %v787_v7 }
 0x400   :  { %3627 = vmatpush3.bf16.msra.mxu0 %v4316_v25  ;;  %v756_v62 = vpop.xlane.xlu1 %755  ;;  %v765_v2 = vpop.xlane.xlu0 %764  ;;  %v790_v13 = vmul.f32 %v3817_v9, %v4307_v16 }
 0x401   :  { %3828 = vrcp.f32 %v756_v62  ;;  %v3819_v14 = vpop.eup %3818 }
 0x402   :  { %3830 = vrcp.f32 %v759_v6  ;;  %3394 = vmatprep.mubr.msk.f32.mxu1 %vm59_vm0, %v790_v13  ;;  %v789_v8 = vmul.f32 %v3819_v14, %v4310_v20 }
 0x403   :  { %v3821_v57 = vpop.eup %3820 }
 0x404   :  { %v762_v11 = vpop.xlane.xlu1 %761  ;;  %v3764_v15 = vpop.permute.xlu0 %3763  ;;  %v788_v4 = vmul.f32 %v3821_v57, %v4318_v26 }
 0x405   :  { %3832 = vrcp.f32 %v762_v11  ;;  %v3766_v17 = vunpack.i.h.bf16 %v3764_v15  ;;  %v3765_v18 = vunpack.i.l.bf16 %v3764_v15  ;;  %v3823_v19 = vpop.eup %3822 }
 0x406   :  { %3834 = vrcp.f32 %v765_v2  ;;  %3383 = vmatprep.mubr.msk.f32.mxu0 %vm59_vm0, %v788_v4  ;;  %v791_v26 = vmul.f32 %v3823_v19, %v4296_v1  ;;  %v3089_v19 = vld [vmem:[%s4966_s4 + $0x1] ss:$0 sm:$0xff] }
 0x407   :  { %3384 = vmatmul.mubr.msk.f32.gmra.mrb[18].mxu0 %vm59_vm0, %v789_v8  ;;  %v3620_v16 = vpack.c.bf16 %v3766_v17, %v3765_v18  ;;  %v3825_v22 = vpop.eup %3824 }
 0x408   :  { %v3769_v21 = vpop.permute.xlu1 %3768  ;;  %v3827_v24 = vpop.eup %3826  ;;  %v792_v20 = vmul.f32 %v3825_v22, %v4327_v37 }
 0x409   :  { %v3771_v23 = vunpack.i.h.bf16 %v3769_v21  ;;  %v3770_v10 = vunpack.i.l.bf16 %v3769_v21  ;;  %3621 = vmatprep.subr.bf16.mxu1 %v3620_v16  ;;  %v793_v40 = vmul.f32 %v3827_v24, %v4321_v27 }
 0x40a   :  { %3623 = vmatpush3.bf16.msra.mxu1 %v3620_v16 }
 0x40b   :  { %v3829_v25 = vpop.eup %3828  ;;  %v3628_v12 = vpack.c.bf16 %v3771_v23, %v3770_v10 }
 0x40c   :  { %v3831_v33 = vpop.eup %3830  ;;  %v794_v31 = vmul.f32 %v3829_v25, %v4335_v42 }
 0x40d   :  { %3395 = vmatmul.mubr.msk.f32.vlgmr.msra.gmra.mrb[8].mxu1 %vm59_vm0, %v791_v26  ;;  %3629 = vmatprep.subr.bf16.mxu0 %v3628_v12  ;;  %v795_v35 = vmul.f32 %v3831_v33, %v4329_v38 }
 0x40e   :  { %3397 = vmatprep.mubr.msk.f32.mxu1 %vm59_vm0, %v792_v20  ;;  %3631 = vmatpush3.bf16.msra.mxu0 %v3628_v12 }
 0x40f   :  { %v3833_v34 = vpop.eup %3832  ;;  %3408 = vmatprep.mubr.msk.f32.mxu0 %vm59_vm0, %v794_v31 }
 0x410   :  { %v3835_v1 = vpop.eup %3834  ;;  %v796_v41 = vmul.f32 %v3833_v34, %v4343_v47  ;;  %v3084_v47 = vld [vmem:[%s4965_s3 + $0x20] sm:$0xff] }
 0x411   :  { %3398 = vmatmul.mubr.msk.f32.gmra.mrb[10].mxu1 %vm59_vm0, %v793_v40  ;;  %3409 = vmatmul.mubr.msk.f32.vlgmr.msra.gmra.mrb[20].mxu0 %vm59_vm0, %v795_v35  ;;  %v797_v37 = vmul.f32 %v3835_v1, %v4337_v43  ;;  %v3085_v43 = vld [vmem:[%s4965_s3 + $0x28] sm:$0xff]  ;;  %s3951_s3 = smov 24  }
 0x412   :  { %3411 = vmatprep.mubr.msk.f32.mxu0 %vm59_vm0, %v796_v41  ;;  %v3632_v50 = vpack.c.bf16 %v3085_v43, %v3084_v47 }
 0x414   :  { %3633 = vmatprep.subr.bf16.mxu1 %v3632_v50 }
 0x415   :  { %3412 = vmatmul.mubr.msk.f32.gmra.mrb[22].mxu0 %vm59_vm0, %v797_v37  ;;  %3635 = vmatpush3.bf16.msra.mxu1 %v3632_v50 }
 0x416   :  { %3637 = vmatprep.subr.bf16.mxu1 %v3636_v58 }
 0x419   :  { %3639 = vmatpush3.bf16.msra.mxu1 %v3636_v58 }
 0x478   :  { %v3368_v42 = vpop.f32.mrb[4].mxu1 }
 0x479   :  { %v888_v44 = vpop.f32.mrb[5].mxu1 }
 0x47c   :  { %v3371_v38 = vpop.f32.mrb[6].mxu1 }
 0x47d   :  { %v898_v46 = vpop.f32.mrb[7].mxu1 }
 0x4d2   :  { %v3382_v48 = vpop.f32.mrb[16].mxu0 }
 0x4d3   :  { %1240 = vrot.lane.b32.xlu1 %v3382_v48, %s3949_s1  ;;  %v997_v27 = vpop.f32.mrb[17].mxu0 }
 0x4d4   :  { %1238 = vrot.lane.b32.xlu0 %v997_v27, %s3949_s1 }
 0x4da   :  { %v3385_v49 = vpop.f32.mrb[18].mxu0 }
 0x4db   :  { %v1007_v52 = vpop.f32.mrb[19].mxu0 }
 0x4e0   :  { %v3396_v51 = vpop.f32.mrb[8].mxu1 }
 0x4e1   :  { %1256 = vrot.lane.b32.xlu1 %v3396_v51, %s3950_s17  ;;  %v1106_v59 = vpop.f32.mrb[9].mxu1 }
 0x4e2   :  { %1254 = vrot.lane.b32.xlu0 %v1106_v59, %s3950_s17 }
 0x4e4   :  { %v3399_v39 = vpop.f32.mrb[10].mxu1  ;;  %v3410_v53 = vpop.f32.mrb[20].mxu0 }
 0x4e5   :  { %v1215_v36 = vpop.f32.mrb[21].mxu0  ;;  %1244 = vrot.lane.b32.xlu1 %v3385_v49, %s3949_s1  ;;  %v1116_v61 = vpop.f32.mrb[11].mxu1 }
 0x4e6   :  { %1242 = vrot.lane.b32.xlu0 %v1007_v52, %s3949_s1 }
 0x4e8   :  { %v3413_v54 = vpop.f32.mrb[22].mxu0 }
 0x4e9   :  { %v1225_v30 = vpop.f32.mrb[23].mxu0  ;;  %1260 = vrot.lane.b32.xlu1 %v3399_v39, %s3950_s17 }
 0x4ea   :  { %1258 = vrot.lane.b32.xlu0 %v1116_v61, %s3950_s17 }
 0x4ed   :  { %1272 = vrot.lane.b32.xlu1 %v3410_v53, %s3951_s3 }
 0x4ee   :  { %1270 = vrot.lane.b32.xlu0 %v1215_v36, %s3951_s3 }
 0x4f1   :  { %1276 = vrot.lane.b32.xlu1 %v3413_v54, %s3951_s3 }
 0x4f2   :  { %1274 = vrot.lane.b32.xlu0 %v1225_v30, %s3951_s3 }
 0x545   :  { %v1241_v63 = vpop.permute.xlu1 %1240 }
 0x546   :  { %v1239_v56 = vpop.permute.xlu0 %1238  ;;  %v1283_v7 = vsel %vm193_vm1, %v3368_v42, %v1241_v63 }
 0x547   :  { %v1282_v6 = vsel %vm193_vm1, %v888_v44, %v1239_v56 }
 0x553   :  { %v1257_v0 = vpop.permute.xlu1 %1256 }
 0x554   :  { %v1255_v28 = vpop.permute.xlu0 %1254  ;;  %v1288_v2 = vsel %vm1286_vm3, %v1283_v7, %v1257_v0 }
 0x555   :  { %v1287_v9 = vsel %vm1286_vm3, %v1282_v6, %v1255_v28 }
 0x557   :  { %v1245_v29 = vpop.permute.xlu1 %1244 }
 0x558   :  { %v1243_v3 = vpop.permute.xlu0 %1242  ;;  %v1285_v15 = vsel %vm193_vm1, %v3371_v38, %v1245_v29 }
 0x559   :  { %v1284_v57 = vsel %vm193_vm1, %v898_v46, %v1243_v3 }
 0x55b   :  { %v1261_v60 = vpop.permute.xlu1 %1260 }
 0x55c   :  { %v1259_v5 = vpop.permute.xlu0 %1258  ;;  %v1290_v18 = vsel %vm1286_vm3, %v1285_v15, %v1261_v60 }
 0x55d   :  { %v1289_v4 = vsel %vm1286_vm3, %v1284_v57, %v1259_v5 }
 0x55f   :  { %v1273_v32 = vpop.permute.xlu1 %1272 }
 0x560   :  { %v1271_v62 = vpop.permute.xlu0 %1270  ;;  %v1293_v14 = vsel %vm1291_vm4, %v1288_v2, %v1273_v32 }
 0x561   :  { %v1292_v13 = vsel %vm1291_vm4, %v1287_v9, %v1271_v62 }
 0x562   :  { %3422 = vmatprep.mubr.msk.f32.mxu1 %vm59_vm0, %v1292_v13 }
 0x563   :  { %v1277_v11 = vpop.permute.xlu1 %1276  ;;  %3423 = vmatmul.mubr.msk.f32.vlgmr.msra.gmra.mrb[12].mxu1 %vm59_vm0, %v1293_v14 }
 0x564   :  { %v1275_v17 = vpop.permute.xlu0 %1274  ;;  %v1295_v16 = vsel %vm1291_vm4, %v1290_v18, %v1277_v11 }
 0x565   :  { %v1294_v8 = vsel %vm1291_vm4, %v1289_v4, %v1275_v17 }
 0x566   :  { %3425 = vmatprep.mubr.msk.f32.mxu1 %vm59_vm0, %v1294_v8 }
 0x567   :  { %3426 = vmatmul.mubr.msk.f32.gmra.mrb[14].mxu1 %vm59_vm0, %v1295_v16 }
 0x636   :  { %v3424_v21 = vpop.f32.mrb[12].mxu1 }
 0x637   :  { %v4427_v22 = vadd.f32 %v3424_v21, %v3089_v19  ;;  %v1387_v23 = vpop.f32.mrb[13].mxu1 }
 0x638   :  { %v4429_v10 = vadd.f32 %v3089_v19, %v1387_v23 }
 0x639   :  { %v1433_v24 = vsel %vm1418_vm5, %v4427_v22, -inf  ;;  %v1411_v25 = vcombine.high %v4427_v22, %v4427_v22 }
 0x63a   :  { %v3427_v26 = vpop.f32.mrb[14].mxu1  ;;  %3430 = vmatprep.mubr.msk.f32.mxu0 %vm193_vm1, %v4429_v10  ;;  %v1434_v12 = vrot.slane %v1433_v24, 4  ;;  %v1419_v33 = vsel %vm1418_vm5, %v4429_v10, -inf  ;;  %v1410_v20 = vcombine.high %v4429_v10, %v4429_v10 }
 0x63b   :  { %v1397_v31 = vpop.f32.mrb[15].mxu1  ;;  %v1420_v34 = vrot.slane %v1419_v33, 4  ;;  %v1440_v35 = vsel %vm1418_vm5, %v1411_v25, -inf  ;;  %v4447_v27 = vadd.f32 %v3427_v26, %v3089_v19 }
 0x63c   :  { %v4442_v40 = vadd.f32 %v3089_v19, %v1397_v31  ;;  %v1435_v1 = vmax.f32 %v1433_v24, %v1434_v12  ;;  %v1441_v41 = vrot.slane %v1440_v35, 4  ;;  %v1426_v37 = vsel %vm1418_vm5, %v1410_v20, -inf }
 0x63d   :  { %v1421_v42 = vmax.f32 %v1419_v33, %v1420_v34  ;;  %v1427_v44 = vrot.slane %v1426_v37, 4  ;;  %v1461_v51 = vsel %vm1418_vm5, %v4447_v27, -inf  ;;  %v1413_v36 = vcombine.high %v4447_v27, %v4447_v27 }
 0x63e   :  { %3433 = vmatprep.mubr.msk.f32.mxu1 %vm193_vm1, %v4442_v40  ;;  %v1436_v38 = vrot.slane %v1435_v1, 2  ;;  %v1442_v46 = vmax.f32 %v1440_v35, %v1441_v41  ;;  %v1462_v61 = vrot.slane %v1461_v51, 4  ;;  %v1412_v56 = vcombine.high %v4442_v40, %v4442_v40 }
 0x63f   :  { %v1422_v48 = vrot.slane %v1421_v42, 2  ;;  %v1428_v50 = vmax.f32 %v1426_v37, %v1427_v44  ;;  %v1468_v63 = vsel %vm1418_vm5, %v1413_v36, -inf  ;;  %v1447_v0 = vsel %vm1418_vm5, %v4442_v40, -inf }
 0x640   :  { %v1437_v47 = vmax.f32 %v1435_v1, %v1436_v38  ;;  %v1443_v43 = vrot.slane %v1442_v46, 2  ;;  %v1463_v28 = vmax.f32 %v1461_v51, %v1462_v61  ;;  %v1469_v29 = vrot.slane %v1468_v63, 4 }
 0x641   :  { %v1423_v49 = vmax.f32 %v1421_v42, %v1422_v48  ;;  %v1429_v53 = vrot.slane %v1428_v50, 2  ;;  %v1448_v60 = vrot.slane %v1447_v0, 4  ;;  %v1454_v5 = vsel %vm1418_vm5, %v1412_v56, -inf }
 0x642   :  { %v1438_v52 = vrot.slane %v1437_v47, 1  ;;  %v1444_v55 = vmax.f32 %v1442_v46, %v1443_v43  ;;  %v1464_v6 = vrot.slane %v1463_v28, 2  ;;  %v1470_v32 = vmax.f32 %v1468_v63, %v1469_v29 }
 0x643   :  { %v1424_v45 = vrot.slane %v1423_v49, 1  ;;  %v1430_v30 = vmax.f32 %v1428_v50, %v1429_v53  ;;  %v1455_v7 = vrot.slane %v1454_v5, 4  ;;  %v1449_v62 = vmax.f32 %v1447_v0, %v1448_v60 }
 0x644   :  { %v4449_v58 = vmax.f32 %v1437_v47, %v1438_v52  ;;  %v1445_v39 = vrot.slane %v1444_v55, 1  ;;  %v1465_v2 = vmax.f32 %v1463_v28, %v1464_v6  ;;  %v1471_v13 = vrot.slane %v1470_v32, 2 }
 0x645   :  { %v1425_v59 = vmax.f32 %v1423_v49, %v1424_v45  ;;  %v1431_v3 = vrot.slane %v1430_v30, 1  ;;  %v1456_v14 = vmax.f32 %v1454_v5, %v1455_v7  ;;  %v1450_v57 = vrot.slane %v1449_v62, 2 }
 0x646   :  { %1511 = vrot.lane.b32.xlu1 %v4449_v58, %s3944_s11  ;;  %v4458_v54 = vmax.f32 %v1444_v55, %v1445_v39  ;;  %v1466_v11 = vrot.slane %v1465_v2, 1  ;;  %v1472_v15 = vmax.f32 %v1470_v32, %v1471_v13  ;;  %v1558_v33 = vrot.slane %v4449_v58, 6 }
 0x647   :  { %1507 = vrot.lane.b32.xlu0 %v1425_v59, %s3944_s11  ;;  %v1432_v9 = vmax.f32 %v1430_v30, %v1431_v3  ;;  %v1457_v4 = vrot.slane %v1456_v14, 2  ;;  %v1451_v17 = vmax.f32 %v1449_v62, %v1450_v57 }
 0x648   :  { %v1467_v18 = vmax.f32 %v1465_v2, %v1466_v11  ;;  %v1473_v8 = vrot.slane %v1472_v15, 1  ;;  %v1561_v31 = vrot.slane %v4458_v54, 5 }
 0x649   :  { %v1458_v16 = vmax.f32 %v1456_v14, %v1457_v4  ;;  %v1452_v19 = vrot.slane %v1451_v17, 1  ;;  %v1555_v26 = vrot.slane %v1432_v9, 7 }
 0x64a   :  { %1527 = vrot.lane.b32.xlu1 %v4449_v58, %s3945_s12  ;;  %v1474_v21 = vmax.f32 %v1472_v15, %v1473_v8  ;;  %v1570_v42 = vrot.slane %v1467_v18, 2 }
 0x64b   :  { %1529 = vrot.lane.b32.xlu0 %v4458_v54, %s3945_s12  ;;  %v1459_v23 = vrot.slane %v1458_v16, 1  ;;  %v1453_v24 = vmax.f32 %v1451_v17, %v1452_v19  ;;  %v1557_v12 = vsel %vm1556_vm6, %v1555_v26, %v1425_v59 }
 0x64c   :  { %v1560_v20 = vsel %vm1559_vm7, %v1558_v33, %v1557_v12  ;;  %v1573_v38 = vrot.slane %v1474_v21, 1 }
 0x64d   :  { %v1460_v25 = vmax.f32 %v1458_v16, %v1459_v23  ;;  %v1564_v34 = vrot.slane %v1453_v24, 4  ;;  %v1563_v35 = vsel %vm1562_vm8, %v1561_v31, %v1560_v20 }
 0x64e   :  { %1543 = vrot.lane.b32.xlu1 %v4449_v58, %s3946_s13 }
 0x64f   :  { %1545 = vrot.lane.b32.xlu0 %v4458_v54, %s3946_s13  ;;  %v1567_v1 = vrot.slane %v1460_v25, 3  ;;  %v1566_v41 = vsel %vm1565_vm9, %v1564_v34, %v1563_v35 }
 0x651   :  { %v1569_v37 = vsel %vm1568_vm10, %v1567_v1, %v1566_v41 }
 0x652   :  { %1523 = vrot.lane.b32.xlu1 %v1425_v59, %s3945_s12  ;;  %v1572_v44 = vsel %vm1571_vm11, %v1570_v42, %v1569_v37 }
 0x653   :  { %1509 = vrot.lane.b32.xlu0 %v1432_v9, %s3944_s11  ;;  %v4512_v46 = vsel %vm1574_vm12, %v1573_v38, %v1572_v44 }
 0x656   :  { %1539 = vrot.lane.b32.xlu1 %v1425_v59, %s3946_s13 }
 0x657   :  { %1525 = vrot.lane.b32.xlu0 %v1432_v9, %s3945_s12 }
 0x65a   :  { %1513 = vrot.lane.b32.xlu1 %v4458_v54, %s3944_s11 }
 0x65b   :  { %1541 = vrot.lane.b32.xlu0 %v1432_v9, %s3946_s13 }
 0x65e   :  { %1535 = vrot.lane.b32.xlu1 %v1467_v18, %s3945_s12 }
 0x65f   :  { %1519 = vrot.lane.b32.xlu0 %v1467_v18, %s3944_s11 }
 0x662   :  { %1521 = vrot.lane.b32.xlu1 %v1474_v21, %s3944_s11 }
 0x663   :  { %1515 = vrot.lane.b32.xlu0 %v1453_v24, %s3944_s11 }
 0x666   :  { %1517 = vrot.lane.b32.xlu1 %v1460_v25, %s3944_s11 }
 0x667   :  { %1531 = vrot.lane.b32.xlu0 %v1453_v24, %s3945_s12 }
 0x66a   :  { %1537 = vrot.lane.b32.xlu1 %v1474_v21, %s3945_s12 }
 0x66b   :  { %1547 = vrot.lane.b32.xlu0 %v1453_v24, %s3946_s13 }
 0x66e   :  { %1533 = vrot.lane.b32.xlu1 %v1460_v25, %s3945_s12 }
 0x66f   :  { %1549 = vrot.lane.b32.xlu0 %v1460_v25, %s3946_s13 }
 0x672   :  { %1553 = vrot.lane.b32.xlu1 %v1474_v21, %s3946_s13 }
 0x673   :  { %1551 = vrot.lane.b32.xlu0 %v1467_v18, %s3946_s13 }
 0x676   :  { %1477 = vrot.lane.b32.xlu1 %v4427_v22, %s3944_s11 }
 0x677   :  { %1475 = vrot.lane.b32.xlu0 %v4429_v10, %s3944_s11 }
 0x67a   :  { %1485 = vrot.lane.b32.xlu1 %v4427_v22, %s3945_s12 }
 0x67b   :  { %1479 = vrot.lane.b32.xlu0 %v4442_v40, %s3944_s11 }
 0x67e   :  { %1493 = vrot.lane.b32.xlu1 %v4427_v22, %s3946_s13 }
 0x67f   :  { %1576 = vrot.lane.b32.xlu0 %v4512_v46, %s3947_s14 }
 0x683   :  { %1481 = vrot.lane.b32.xlu0 %v4447_v27, %s3944_s11 }
 0x687   :  { %1483 = vrot.lane.b32.xlu0 %v4429_v10, %s3945_s12 }
 0x68b   :  { %1491 = vrot.lane.b32.xlu0 %v4429_v10, %s3946_s13 }
 0x68f   :  { %1487 = vrot.lane.b32.xlu0 %v4442_v40, %s3945_s12 }
 0x693   :  { %1495 = vrot.lane.b32.xlu0 %v4442_v40, %s3946_s13 }
 0x6b8   :  { %v1512_v48 = vpop.permute.xlu1 %1511 }
 0x6b9   :  { %v1508_v47 = vpop.permute.xlu0 %1507  ;;  %v1675_v63 = vrot.slane %v1512_v48, 6 }
 0x6bc   :  { %v1528_v43 = vpop.permute.xlu1 %1527 }
 0x6bd   :  { %v1530_v49 = vpop.permute.xlu0 %1529  ;;  %v1786_v13 = vrot.slane %v1528_v43, 6 }
 0x6be   :  { %v1788_v18 = vrot.slane %v1530_v49, 5 }
 0x6c0   :  { %v1544_v50 = vpop.permute.xlu1 %1543 }
 0x6c1   :  { %v1546_v52 = vpop.permute.xlu0 %1545  ;;  %v1897_v16 = vrot.slane %v1544_v50, 6 }
 0x6c2   :  { %v1899_v20 = vrot.slane %v1546_v52, 5 }
 0x6c4   :  { %v1524_v55 = vpop.permute.xlu1 %1523 }
 0x6c5   :  { %v1510_v45 = vpop.permute.xlu0 %1509 }
 0x6c6   :  { %v1673_v10 = vrot.slane %v1510_v45, 7 }
 0x6c8   :  { %v1540_v58 = vpop.permute.xlu1 %1539  ;;  %v1674_v54 = vsel %vm1556_vm6, %v1673_v10, %v1508_v47 }
 0x6c9   :  { %v1526_v51 = vpop.permute.xlu0 %1525  ;;  %v1676_v28 = vsel %vm1559_vm7, %v1675_v63, %v1674_v54  ;;  %v45_v63 = vld [vmem:[%s4964_s2 + $0x8] sm:$0xff] }
 0x6ca   :  { %v1784_v0 = vrot.slane %v1526_v51, 7 }
 0x6cc   :  { %v1514_v59 = vpop.permute.xlu1 %1513  ;;  %v1785_v7 = vsel %vm1556_vm6, %v1784_v0, %v1524_v55 }
 0x6cd   :  { %v1542_v39 = vpop.permute.xlu0 %1541  ;;  %v1677_v30 = vrot.slane %v1514_v59, 5  ;;  %v1787_v4 = vsel %vm1559_vm7, %v1786_v13, %v1785_v7 }
 0x6ce   :  { %v1895_v9 = vrot.slane %v1542_v39, 7  ;;  %v1789_v21 = vsel %vm1562_vm8, %v1788_v18, %v1787_v4 }
 0x6cf   :  { %v1678_v3 = vsel %vm1562_vm8, %v1677_v30, %v1676_v28  ;;  %v4598_v28 = vld [vmem:[%s4964_s2 + $0x10] sm:$0xff] }
 0x6d0   :  { %v1536_v53 = vpop.permute.xlu1 %1535  ;;  %v1896_v8 = vsel %vm1556_vm6, %v1895_v9, %v1540_v58 }
 0x6d1   :  { %v1520_v36 = vpop.permute.xlu0 %1519  ;;  %v1898_v25 = vsel %vm1559_vm7, %v1897_v16, %v1896_v8  ;;  %v1794_v26 = vrot.slane %v1536_v53, 2 }
 0x6d2   :  { %v1683_v6 = vrot.slane %v1520_v36, 2  ;;  %v1900_v37 = vsel %vm1562_vm8, %v1899_v20, %v1898_v25 }
 0x6d4   :  { %v1522_v61 = vpop.permute.xlu1 %1521 }
 0x6d5   :  { %v1516_v40 = vpop.permute.xlu0 %1515  ;;  %v1685_v62 = vrot.slane %v1522_v61, 1 }
 0x6d6   :  { %v1679_v56 = vrot.slane %v1516_v40, 4 }
 0x6d8   :  { %v1518_v29 = vpop.permute.xlu1 %1517  ;;  %v1680_v32 = vsel %vm1565_vm9, %v1679_v56, %v1678_v3  ;;  %v47_v56 = vld [vmem:[%s4964_s2 + $0x18] sm:$0xff] }
 0x6d9   :  { %v1681_v60 = vrot.slane %v1518_v29, 3  ;;  %v1532_v5 = vpop.permute.xlu0 %1531 }
 0x6da   :  { %v1790_v17 = vrot.slane %v1532_v5, 4  ;;  %v44_v5 = vld [vmem:[%s4964_s2] sm:$0xff] }
 0x6db   :  { %v1682_v2 = vsel %vm1568_vm10, %v1681_v60, %v1680_v32 }
 0x6dc   :  { %v1538_v14 = vpop.permute.xlu1 %1537  ;;  %v1684_v57 = vsel %vm1571_vm11, %v1683_v6, %v1682_v2  ;;  %v1791_v12 = vsel %vm1565_vm9, %v1790_v17, %v1789_v21 }
 0x6dd   :  { %v1548_v11 = vpop.permute.xlu0 %1547  ;;  %v4534_v15 = vsel %vm1574_vm12, %v1685_v62, %v1684_v57  ;;  %v1796_v31 = vrot.slane %v1538_v14, 1 }
 0x6de   :  { %1687 = vrot.lane.b32.xlu1 %v4534_v15, %s3947_s14  ;;  %v1901_v33 = vrot.slane %v1548_v11, 4 }
 0x6e0   :  { %v1534_v19 = vpop.permute.xlu1 %1533  ;;  %v1902_v38 = vsel %vm1565_vm9, %v1901_v33, %v1900_v37 }
 0x6e1   :  { %v1792_v23 = vrot.slane %v1534_v19, 3  ;;  %v1550_v24 = vpop.permute.xlu0 %1549 }
 0x6e2   :  { %v1903_v35 = vrot.slane %v1550_v24, 3 }
 0x6e3   :  { %v1793_v34 = vsel %vm1568_vm10, %v1792_v23, %v1791_v12 }
 0x6e4   :  { %v1554_v1 = vpop.permute.xlu1 %1553  ;;  %v1795_v41 = vsel %vm1571_vm11, %v1794_v26, %v1793_v34  ;;  %v1904_v47 = vsel %vm1568_vm10, %v1903_v35, %v1902_v38 }
 0x6e5   :  { %v1552_v42 = vpop.permute.xlu0 %1551  ;;  %v4547_v44 = vsel %vm1574_vm12, %v1796_v31, %v1795_v41  ;;  %v1907_v43 = vrot.slane %v1554_v1, 1 }
 0x6e6   :  { %v1905_v48 = vrot.slane %v1552_v42, 2  ;;  %1798 = vrot.lane.b32.xlu1 %v4547_v44, %s3947_s14 }
 0x6e8   :  { %v1906_v49 = vsel %vm1571_vm11, %v1905_v48, %v1904_v47  ;;  %v1478_v59 = vpop.permute.xlu1 %1477 }
 0x6e9   :  { %v1476_v50 = vpop.permute.xlu0 %1475  ;;  %v4555_v52 = vsel %vm1574_vm12, %v1907_v43, %v1906_v49 }
 0x6ea   :  { %1909 = vrot.lane.b32.xlu1 %v4555_v52, %s3947_s14 }
 0x6ec   :  { %v1486_v39 = vpop.permute.xlu1 %1485 }
 0x6ed   :  { %v1480_v55 = vpop.permute.xlu0 %1479 }
 0x6ee   :  { %1489 = vrot.lane.b32.xlu1 %v4447_v27, %s3945_s12 }
 0x6f0   :  { %v1494_v53 = vpop.permute.xlu1 %1493 }
 0x6f1   :  { %v1577_v45 = vpop.permute.xlu0 %1576 }
 0x6f2   :  { %1497 = vrot.lane.b32.xlu1 %v4447_v27, %s3946_s13  ;;  %3428 = vmatprep.subr.msk.mxu0 %vm193_vm1, %v1577_v45 }
 0x6f3   :  { %3680 = vmatprep.subr.msk.mxu1 %vm193_vm1, %v1577_v45  ;;  %3429 = vmatpush3.xpose.msk.msra.mxu0 %vm193_vm1, %v1577_v45 }
 0x6f4   :  { %3681 = vmatpush3.xpose.msk.msra.mxu1 %vm193_vm1, %v1577_v45 }
 0x6f5   :  { %v1482_v58 = vpop.permute.xlu0 %1481 }
 0x6f6   :  { %3431 = vmatmul.mubr.msk.f32.vlgmr.msra.gmra.mrb[24].mxu0 %vm193_vm1, %v4427_v22 }
 0x6f7   :  { %3434 = vmatmul.mubr.msk.f32.vlgmr.msra.gmra.mrb[16].mxu1 %vm193_vm1, %v4447_v27 }
 0x6f8   :  { %3438 = vmatprep.mubr.msk.f32.mxu1 %vm193_vm1, %v1476_v50 }
 0x6f9   :  { %v1484_v51 = vpop.permute.xlu0 %1483 }
 0x6fa   :  { %3446 = vmatprep.mubr.msk.f32.mxu0 %vm193_vm1, %v1484_v51 }
 0x6fd   :  { %v1492_v36 = vpop.permute.xlu0 %1491 }
 0x701   :  { %v1488_v27 = vpop.permute.xlu0 %1487 }
 0x705   :  { %v1496_v30 = vpop.permute.xlu0 %1495 }
 0x750   :  { %v1688_v10 = vpop.permute.xlu1 %1687 }
 0x751   :  { %3436 = vmatprep.subr.msk.mxu1 %vm193_vm1, %v1688_v10 }
 0x752   :  { %3437 = vmatpush3.xpose.msk.msra.mxu1 %vm193_vm1, %v1688_v10 }
 0x755   :  { %3439 = vmatmul.mubr.msk.f32.vlgmr.msra.gmra.mrb[18].mxu1 %vm193_vm1, %v1478_v59 }
 0x756   :  { %3441 = vmatprep.mubr.msk.f32.mxu1 %vm193_vm1, %v1480_v55 }
 0x758   :  { %v1799_v22 = vpop.permute.xlu1 %1798 }
 0x759   :  { %3442 = vmatmul.mubr.msk.f32.gmra.mrb[20].mxu1 %vm193_vm1, %v1482_v58  ;;  %3444 = vmatprep.subr.msk.mxu0 %vm193_vm1, %v1799_v22 }
 0x75a   :  { %3445 = vmatpush3.xpose.msk.msra.mxu0 %vm193_vm1, %v1799_v22  ;;  %3454 = vmatprep.mubr.msk.f32.mxu1 %vm193_vm1, %v1492_v36 }
 0x75c   :  { %v1910_v61 = vpop.permute.xlu1 %1909 }
 0x75d   :  { %3447 = vmatmul.mubr.msk.f32.vlgmr.msra.gmra.mrb[26].mxu0 %vm193_vm1, %v1486_v39  ;;  %3452 = vmatprep.subr.msk.mxu1 %vm193_vm1, %v1910_v61 }
 0x75e   :  { %3449 = vmatprep.mubr.msk.f32.mxu0 %vm193_vm1, %v1488_v27  ;;  %3453 = vmatpush3.xpose.msk.msra.mxu1 %vm193_vm1, %v1910_v61 }
 0x760   :  { %v1490_v54 = vpop.permute.xlu1 %1489 }
 0x761   :  { %3450 = vmatmul.mubr.msk.f32.gmra.mrb[28].mxu0 %vm193_vm1, %v1490_v54  ;;  %3455 = vmatmul.mubr.msk.f32.vlgmr.msra.gmra.mrb[22].mxu1 %vm193_vm1, %v1494_v53 }
 0x762   :  { %3457 = vmatprep.mubr.msk.f32.mxu1 %vm193_vm1, %v1496_v30 }
 0x764   :  { %v1498_v40 = vpop.permute.xlu1 %1497 }
 0x765   :  { %3458 = vmatmul.mubr.msk.f32.gmra.mrb[24].mxu1 %vm193_vm1, %v1498_v40 }
 0x7c9   :  { %v3432_v0 = vpop.f32.mrb[24].mxu0 }
 0x7ca   :  { %v4600_v29 = vadd.f32 %v3432_v0, %v45_v63  ;;  %v3435_v3 = vpop.f32.mrb[16].mxu1  ;;  %v1654_v60 = vpop.f32.mrb[25].mxu0 }
 0x7cb   :  { %v4605_v6 = vadd.f32 %v3435_v3, %v47_v56  ;;  %v1664_v32 = vpop.f32.mrb[17].mxu1  ;;  %v4612_v62 = vadd.f32 %v1654_v60, %v44_v5 }
 0x7cc   :  { %v4608_v7 = vadd.f32 %v1664_v32, %v4598_v28  ;;  %v2009_v9 = vsel %vm193_vm1, %v4600_v29, -inf }
 0x7cd   :  { %v2015_v2 = vsel %vm193_vm1, %v4605_v6, -inf  ;;  %2010 = vmax.xlane.f32.xlu1 %v2009_v9  ;;  %v2006_v14 = vsel %vm193_vm1, %v4612_v62, -inf }
 0x7ce   :  { %2016 = vmax.xlane.f32.xlu0 %v2015_v2  ;;  %v2012_v13 = vsel %vm193_vm1, %v4608_v7, -inf }
 0x7d1   :  { %2013 = vmax.xlane.f32.xlu1 %v2012_v13 }
 0x7d2   :  { %2007 = vmax.xlane.f32.xlu0 %v2006_v14 }
 0x828   :  { %v3440_v57 = vpop.f32.mrb[18].mxu1 }
 0x829   :  { %v4620_v11 = vadd.f32 %v3440_v57, %v45_v63  ;;  %v1765_v4 = vpop.f32.mrb[19].mxu1 }
 0x82a   :  { %v4628_v24 = vadd.f32 %v1765_v4, %v44_v5 }
 0x82b   :  { %v2021_v17 = vsel %vm193_vm1, %v4620_v11, -inf }
 0x82c   :  { %2022 = vmax.xlane.f32.xlu0 %v2021_v17  ;;  %v3443_v18 = vpop.f32.mrb[20].mxu1  ;;  %v2018_v1 = vsel %vm193_vm1, %v4628_v24, -inf }
 0x82d   :  { %v1775_v8 = vpop.f32.mrb[21].mxu1  ;;  %v4637_v35 = vadd.f32 %v3443_v18, %v47_v56 }
 0x82e   :  { %v4633_v26 = vadd.f32 %v1775_v8, %v4598_v28 }
 0x82f   :  { %v2027_v47 = vsel %vm193_vm1, %v4637_v35, -inf }
 0x830   :  { %v3448_v16 = vpop.f32.mrb[26].mxu0  ;;  %v2024_v42 = vsel %vm193_vm1, %v4633_v26, -inf }
 0x831   :  { %v4624_v19 = vadd.f32 %v3448_v16, %v45_v63  ;;  %v1876_v21 = vpop.f32.mrb[27].mxu0 }
 0x832   :  { %v4626_v23 = vadd.f32 %v1876_v21, %v44_v5 }
 0x833   :  { %v2033_v25 = vsel %vm193_vm1, %v4624_v19, -inf }
 0x834   :  { %2034 = vmax.xlane.f32.xlu0 %v2033_v25  ;;  %v3451_v12 = vpop.f32.mrb[28].mxu0  ;;  %v3456_v33 = vpop.f32.mrb[22].mxu1  ;;  %v2030_v20 = vsel %vm193_vm1, %v4626_v23, -inf }
 0x835   :  { %2031 = vmax.xlane.f32.xlu1 %v2030_v20  ;;  %v1886_v31 = vpop.f32.mrb[29].mxu0  ;;  %v1987_v34 = vpop.f32.mrb[23].mxu1  ;;  %v4646_v48 = vadd.f32 %v3451_v12, %v47_v56  ;;  %v4654_v50 = vadd.f32 %v3456_v33, %v45_v63 }
 0x836   :  { %v4642_v41 = vadd.f32 %v1886_v31, %v4598_v28  ;;  %v4650_v43 = vadd.f32 %v1987_v34, %v44_v5 }
 0x837   :  { %v2039_v55 = vsel %vm193_vm1, %v4646_v48, -inf  ;;  %v2045_v51 = vsel %vm193_vm1, %v4654_v50, -inf }
 0x838   :  { %2019 = vmax.xlane.f32.xlu0 %v2018_v1  ;;  %v3459_v37 = vpop.f32.mrb[24].mxu1  ;;  %v2036_v49 = vsel %vm193_vm1, %v4642_v41, -inf  ;;  %v2042_v45 = vsel %vm193_vm1, %v4650_v43, -inf }
 0x839   :  { %2025 = vmax.xlane.f32.xlu1 %v2024_v42  ;;  %v1997_v38 = vpop.f32.mrb[25].mxu1  ;;  %v4660_v58 = vadd.f32 %v3459_v37, %v47_v56 }
 0x83a   :  { %v4681_v60 = vadd.f32 %v1997_v38, %v4598_v28 }
 0x83b   :  { %v2051_v59 = vsel %vm193_vm1, %v4660_v58, -inf }
 0x83c   :  { %2028 = vmax.xlane.f32.xlu0 %v2027_v47  ;;  %v2048_v5 = vsel %vm193_vm1, %v4681_v60, -inf }
 0x83d   :  { %2037 = vmax.xlane.f32.xlu1 %v2036_v49 }
 0x840   :  { %2040 = vmax.xlane.f32.xlu0 %v2039_v55 }
 0x841   :  { %2043 = vmax.xlane.f32.xlu1 %v2042_v45 }
 0x844   :  { %2046 = vmax.xlane.f32.xlu0 %v2045_v51 }
 0x848   :  { %2052 = vmax.xlane.f32.xlu0 %v2051_v59 }
 0x852   :  { %2182 = vrot.lane.b32.xlu1 %v4512_v46, %s3948_s15 }
 0x85a   :  { %v2011_v39 = vpop.xlane.xlu1 %2010 }
 0x85b   :  { %v2055_v53 = vsub.f32 %v4600_v29, %v2011_v39  ;;  %v2017_v10 = vpop.xlane.xlu0 %2016 }
 0x85c   :  { %v2057_v36 = vsub.f32 %v4605_v6, %v2017_v10 }
 0x85d   :  { %v2072_v22 = vmul.f32 1.442695, %v2055_v53 }
 0x85e   :  { %v2076_v27 = vmul.f32 1.442695, %v2057_v36  ;;  %v2014_v30 = vpop.xlane.xlu1 %2013 }
 0x85f   :  { %3836 = vpow2.f32 %v2072_v22  ;;  %v2008_v61 = vpop.xlane.xlu0 %2007  ;;  %v2056_v40 = vsub.f32 %v4608_v7, %v2014_v30 }
 0x860   :  { %3838 = vpow2.f32 %v2076_v27  ;;  %v2054_v54 = vsub.f32 %v4612_v62, %v2008_v61 }
 0x861   :  { %v2074_v29 = vmul.f32 1.442695, %v2056_v40 }
 0x862   :  { %v2070_v63 = vmul.f32 1.442695, %v2054_v54 }
 0x864   :  { %3840 = vpow2.f32 %v2070_v63 }
 0x865   :  { %3842 = vpow2.f32 %v2074_v29 }
 0x869   :  { %v4672_v56 = vpop.eup %3836 }
 0x86a   :  { %v2105_v46 = vsel %vm193_vm1, %v4672_v56, 0.0  ;;  %v4676_v0 = vpop.eup %3838 }
 0x86b   :  { %2106 = vadd.xlane.f32.xlu0 %v2105_v46  ;;  %v2111_v3 = vsel %vm193_vm1, %v4676_v0, 0.0 }
 0x86e   :  { %v4685_v6 = vpop.eup %3840 }
 0x86f   :  { %2112 = vadd.xlane.f32.xlu0 %v2111_v3  ;;  %v2102_v32 = vsel %vm193_vm1, %v4685_v6, 0.0  ;;  %v4689_v7 = vpop.eup %3842 }
 0x870   :  { %v2108_v9 = vsel %vm193_vm1, %v4689_v7, 0.0 }
 0x876   :  { %2049 = vmax.xlane.f32.xlu1 %v2048_v5 }
 0x87a   :  { %2103 = vadd.xlane.f32.xlu1 %v2102_v32 }
 0x87e   :  { %2109 = vadd.xlane.f32.xlu1 %v2108_v9 }
 0x8b9   :  { %v2023_v62 = vpop.xlane.xlu0 %2022 }
 0x8ba   :  { %v2059_v28 = vsub.f32 %v4620_v11, %v2023_v62 }
 0x8bc   :  { %v2080_v2 = vmul.f32 1.442695, %v2059_v28 }
 0x8be   :  { %3844 = vpow2.f32 %v2080_v2 }
 0x8c1   :  { %v2035_v13 = vpop.xlane.xlu0 %2034 }
 0x8c2   :  { %v2063_v14 = vsub.f32 %v4624_v19, %v2035_v13  ;;  %v2032_v57 = vpop.xlane.xlu1 %2031 }
 0x8c3   :  { %v2062_v17 = vsub.f32 %v4626_v23, %v2032_v57 }
 0x8c4   :  { %v2088_v4 = vmul.f32 1.442695, %v2063_v14 }
 0x8c5   :  { %v2020_v18 = vpop.xlane.xlu0 %2019  ;;  %v2086_v25 = vmul.f32 1.442695, %v2062_v17 }
 0x8c6   :  { %3846 = vpow2.f32 %v2088_v4  ;;  %v2058_v8 = vsub.f32 %v4628_v24, %v2020_v18  ;;  %v2026_v16 = vpop.xlane.xlu1 %2025 }
 0x8c7   :  { %v2060_v11 = vsub.f32 %v4633_v26, %v2026_v16 }
 0x8c8   :  { %v4697_v21 = vpop.eup %3844  ;;  %v2078_v12 = vmul.f32 1.442695, %v2058_v8 }
 0x8c9   :  { %v2029_v33 = vpop.xlane.xlu0 %2028  ;;  %v2117_v20 = vsel %vm193_vm1, %v4697_v21, 0.0  ;;  %v2082_v23 = vmul.f32 1.442695, %v2060_v11 }
 0x8ca   :  { %3848 = vpow2.f32 %v2078_v12  ;;  %v2061_v19 = vsub.f32 %v4637_v35, %v2029_v33  ;;  %v2038_v31 = vpop.xlane.xlu1 %2037  ;;  %2118 = vadd.xlane.f32.xlu0 %v2117_v20 }
 0x8cb   :  { %3850 = vpow2.f32 %v2086_v25  ;;  %v2064_v24 = vsub.f32 %v4642_v41, %v2038_v31 }
 0x8cc   :  { %v2084_v34 = vmul.f32 1.442695, %v2061_v19 }
 0x8cd   :  { %v2041_v1 = vpop.xlane.xlu0 %2040  ;;  %v2090_v38 = vmul.f32 1.442695, %v2064_v24 }
 0x8ce   :  { %3852 = vpow2.f32 %v2084_v34  ;;  %v2065_v37 = vsub.f32 %v4646_v48, %v2041_v1  ;;  %v2044_v42 = vpop.xlane.xlu1 %2043 }
 0x8cf   :  { %3854 = vpow2.f32 %v2082_v23  ;;  %v2066_v49 = vsub.f32 %v4650_v43, %v2044_v42 }
 0x8d0   :  { %v4705_v26 = vpop.eup %3846  ;;  %v2092_v47 = vmul.f32 1.442695, %v2065_v37 }
 0x8d1   :  { %v2047_v35 = vpop.xlane.xlu0 %2046  ;;  %v2129_v55 = vsel %vm193_vm1, %v4705_v26, 0.0  ;;  %v2094_v48 = vmul.f32 1.442695, %v2066_v49 }
 0x8d2   :  { %3856 = vpow2.f32 %v2092_v47  ;;  %v2067_v45 = vsub.f32 %v4654_v50, %v2047_v35  ;;  %v2183_v41 = vpop.permute.xlu1 %2182  ;;  %2130 = vadd.xlane.f32.xlu0 %v2129_v55 }
 0x8d3   :  { %3460 = vmatprep.subr.mxu0 %v2183_v41  ;;  %3858 = vpow2.f32 %v2090_v38 }
 0x8d4   :  { %v4711_v51 = vpop.eup %3848  ;;  %v2096_v59 = vmul.f32 1.442695, %v2067_v45  ;;  %3461 = vmatpush3.msra.mxu0 %v2183_v41 }
 0x8d5   :  { %v2053_v39 = vpop.xlane.xlu0 %2052  ;;  %v2114_v43 = vsel %vm193_vm1, %v4711_v51, 0.0  ;;  %v4715_v53 = vpop.eup %3850 }
 0x8d6   :  { %3860 = vpow2.f32 %v2096_v59  ;;  %v2069_v10 = vsub.f32 %v4660_v58, %v2053_v39  ;;  %2115 = vadd.xlane.f32.xlu1 %v2114_v43  ;;  %v2126_v22 = vsel %vm193_vm1, %v4715_v53, 0.0 }
 0x8d7   :  { %3862 = vpow2.f32 %v2094_v48 }
 0x8d8   :  { %v4718_v50 = vpop.eup %3852  ;;  %v2100_v36 = vmul.f32 1.442695, %v2069_v10 }
 0x8d9   :  { %v2123_v27 = vsel %vm193_vm1, %v4718_v50, 0.0  ;;  %v4724_v61 = vpop.eup %3854 }
 0x8da   :  { %3864 = vpow2.f32 %v2100_v36  ;;  %2127 = vadd.xlane.f32.xlu1 %v2126_v22  ;;  %2124 = vadd.xlane.f32.xlu0 %v2123_v27  ;;  %v2120_v58 = vsel %vm193_vm1, %v4724_v61, 0.0 }
 0x8dc   :  { %v4726_v54 = vpop.eup %3856 }
 0x8dd   :  { %v2135_v30 = vsel %vm193_vm1, %v4726_v54, 0.0  ;;  %v4732_v40 = vpop.eup %3858 }
 0x8de   :  { %2121 = vadd.xlane.f32.xlu1 %v2120_v58  ;;  %2136 = vadd.xlane.f32.xlu0 %v2135_v30  ;;  %v2132_v46 = vsel %vm193_vm1, %v4732_v40, 0.0 }
 0x8e0   :  { %v4734_v63 = vpop.eup %3860 }
 0x8e1   :  { %v2141_v29 = vsel %vm193_vm1, %v4734_v63, 0.0  ;;  %v4740_v3 = vpop.eup %3862 }
 0x8e2   :  { %2133 = vadd.xlane.f32.xlu1 %v2132_v46  ;;  %2142 = vadd.xlane.f32.xlu0 %v2141_v29  ;;  %v2138_v32 = vsel %vm193_vm1, %v4740_v3, 0.0 }
 0x8e4   :  { %v4742_v5 = vpop.eup %3864 }
 0x8e5   :  { %v2147_v9 = vsel %vm193_vm1, %v4742_v5, 0.0 }
 0x8e6   :  { %2139 = vadd.xlane.f32.xlu1 %v2138_v32  ;;  %2148 = vadd.xlane.f32.xlu0 %v2147_v9 }
 0x8f7   :  { %2382 = vrot.lane.b32.xlu1 %v4547_v44, %s3948_s15 }
 0x8f8   :  { %v2107_v62 = vpop.xlane.xlu0 %2106 }
 0x8f9   :  { %3866 = vrcp.f32 %v2107_v62 }
 0x8fc   :  { %2282 = vrot.lane.b32.xlu0 %v4534_v15, %s3948_s15  ;;  %v2113_v14 = vpop.xlane.xlu0 %2112 }
 0x903   :  { %v2050_v28 = vpop.xlane.xlu1 %2049  ;;  %v3867_v17 = vpop.eup %3866 }
 0x904   :  { %v2068_v2 = vsub.f32 %v4681_v60, %v2050_v28  ;;  %v2167_v15 = vmul.f32 %v3867_v17, %v4672_v56 }
 0x906   :  { %v2098_v57 = vmul.f32 1.442695, %v2068_v2 }
 0x907   :  { %v2104_v13 = vpop.xlane.xlu1 %2103 }
 0x908   :  { %3868 = vrcp.f32 %v2104_v13 }
 0x909   :  { %3870 = vrcp.f32 %v2113_v14 }
 0x90b   :  { %v2110_v4 = vpop.xlane.xlu1 %2109 }
 0x90c   :  { %3872 = vrcp.f32 %v2110_v4 }
 0x90d   :  { %3874 = vpow2.f32 %v2098_v57 }
 0x912   :  { %v3869_v18 = vpop.eup %3868 }
 0x913   :  { %v2166_v44 = vmul.f32 %v3869_v18, %v4685_v6  ;;  %v3871_v8 = vpop.eup %3870 }
 0x914   :  { %v2169_v12 = vmul.f32 %v3871_v8, %v4676_v0 }
 0x915   :  { %3462 = vmatprep.mubr.msk.f32.mxu0 %vm193_vm1, %v2166_v44 }
 0x916   :  { %v3873_v16 = vpop.eup %3872  ;;  %3463 = vmatmul.mubr.msk.f32.vlgmr.msra.gmra.mrb[30].mxu0 %vm193_vm1, %v2167_v15 }
 0x917   :  { %v4756_v60 = vpop.eup %3874  ;;  %v2168_v25 = vmul.f32 %v3873_v16, %v4689_v7 }
 0x918   :  { %v2144_v11 = vsel %vm193_vm1, %v4756_v60, 0.0 }
 0x919   :  { %3465 = vmatprep.mubr.msk.f32.mxu0 %vm193_vm1, %v2168_v25 }
 0x91a   :  { %3466 = vmatmul.mubr.msk.f32.gmra.mrb[32].mxu0 %vm193_vm1, %v2169_v12 }
 0x91b   :  { %2145 = vadd.xlane.f32.xlu1 %v2144_v11 }
 0x92c   :  { %2482 = vrot.lane.b32.xlu1 %v4555_v52, %s3948_s15 }
 0x957   :  { %v2119_v56 = vpop.xlane.xlu0 %2118 }
 0x95f   :  { %v2131_v6 = vpop.xlane.xlu0 %2130 }
 0x963   :  { %v2116_v33 = vpop.xlane.xlu1 %2115 }
 0x964   :  { %3876 = vrcp.f32 %v2116_v33 }
 0x967   :  { %v2128_v20 = vpop.xlane.xlu1 %2127  ;;  %v2125_v19 = vpop.xlane.xlu0 %2124 }
 0x968   :  { %3878 = vrcp.f32 %v2128_v20 }
 0x969   :  { %3880 = vrcp.f32 %v2119_v56 }
 0x96a   :  { %3882 = vrcp.f32 %v2131_v6 }
 0x96b   :  { %v2122_v7 = vpop.xlane.xlu1 %2121  ;;  %v2137_v0 = vpop.xlane.xlu0 %2136 }
 0x96c   :  { %3884 = vrcp.f32 %v2122_v7 }
 0x96d   :  { %3886 = vrcp.f32 %v2125_v19 }
 0x96e   :  { %v3877_v31 = vpop.eup %3876  ;;  %3888 = vrcp.f32 %v2137_v0  ;;  %v3916_v0 = vld [vmem:[%s4962_s0 + $0x8] sm:$0xff] }
 0x96f   :  { %v2134_v23 = vpop.xlane.xlu1 %2133  ;;  %v2143_v34 = vpop.xlane.xlu0 %2142  ;;  %v2170_v24 = vmul.f32 %v3877_v31, %v4711_v51 }
 0x970   :  { %3890 = vrcp.f32 %v2134_v23 }
 0x971   :  { %3470 = vmatprep.mubr.msk.f32.mxu1 %vm193_vm1, %v2170_v24 }
 0x972   :  { %v3879_v52 = vpop.eup %3878 }
 0x973   :  { %v2140_v1 = vpop.xlane.xlu1 %2139  ;;  %v2149_v37 = vpop.xlane.xlu0 %2148  ;;  %v2174_v42 = vmul.f32 %v3879_v52, %v4715_v53 }
 0x974   :  { %v3881_v38 = vpop.eup %3880  ;;  %3892 = vrcp.f32 %v2140_v1 }
 0x975   :  { %v3883_v47 = vpop.eup %3882  ;;  %3478 = vmatprep.mubr.msk.f32.mxu0 %vm193_vm1, %v2174_v42  ;;  %v2171_v41 = vmul.f32 %v3881_v38, %v4697_v21  ;;  %3894 = vrcp.f32 %v2143_v34  ;;  %v3917_v34 = vld [vmem:[%s4962_s0] sm:$0xff] }
 0x976   :  { %v3885_v49 = vpop.eup %3884  ;;  %v2175_v51 = vmul.f32 %v3883_v47, %v4705_v26  ;;  %3896 = vrcp.f32 %v2149_v37 }
 0x977   :  { %v2383_v35 = vpop.permute.xlu1 %2382  ;;  %v2283_v55 = vpop.permute.xlu0 %2282  ;;  %v2172_v59 = vmul.f32 %v3885_v49, %v4724_v61 }
 0x978   :  { %v3887_v45 = vpop.eup %3886  ;;  %3468 = vmatprep.subr.mxu1 %v2283_v55  ;;  %3476 = vmatprep.subr.mxu0 %v2383_v35 }
 0x979   :  { %v3889_v48 = vpop.eup %3888  ;;  %3469 = vmatpush3.msra.mxu1 %v2283_v55  ;;  %3477 = vmatpush3.msra.mxu0 %v2383_v35  ;;  %v2173_v21 = vmul.f32 %v3887_v45, %v4718_v50 }
 0x97a   :  { %v3891_v39 = vpop.eup %3890  ;;  %3471 = vmatmul.mubr.msk.f32.vlgmr.msra.gmra.mrb[26].mxu1 %vm193_vm1, %v2171_v41  ;;  %3479 = vmatmul.mubr.msk.f32.vlgmr.msra.gmra.mrb[34].mxu0 %vm193_vm1, %v2175_v51  ;;  %v2177_v26 = vmul.f32 %v3889_v48, %v4726_v54  ;;  %v3918_v41 = vld [vmem:[%s4962_s0 + $0x10] sm:$0xff]  ;;  %v3919_v48 = vld [vmem:[%s4962_s0 + $0x18] sm:$0xff]  ;;  %s3020_s0 = sshll.u32 %s3952_s28, 4  ;;  %s3021_s0 = int_to_ptr.vmem [resolvable:$true] %s3020_s0 }
 0x97b   :  { %3473 = vmatprep.mubr.msk.f32.mxu1 %vm193_vm1, %v2172_v59  ;;  %v2176_v43 = vmul.f32 %v3891_v39, %v4732_v40  ;;  %p3925_p1 = scmp.lt.s32.totalorder %s3021_s0, %s3021_s0 }
 0x97d   :  { %3481 = vmatprep.mubr.msk.f32.mxu0 %vm193_vm1, %v2176_v43 }
 0x97e   :  { %v3893_v53 = vpop.eup %3892  ;;  %3474 = vmatmul.mubr.msk.f32.gmra.mrb[28].mxu1 %vm193_vm1, %v2173_v21  ;;  %3482 = vmatmul.mubr.msk.f32.gmra.mrb[36].mxu0 %vm193_vm1, %v2177_v26 }
 0x97f   :  { %v2178_v10 = vmul.f32 %v3893_v53, %v4740_v3  ;;  %v3895_v22 = vpop.eup %3894 }
 0x980   :  { %v2179_v50 = vmul.f32 %v3895_v22, %v4734_v63  ;;  %v3897_v61 = vpop.eup %3896 }
 0x981   :  { %3486 = vmatprep.mubr.msk.f32.mxu1 %vm193_vm1, %v2178_v10  ;;  %v2181_v30 = vmul.f32 %v3897_v61, %v4742_v5 }
 0x9a8   :  { %v2146_v36 = vpop.xlane.xlu1 %2145 }
 0x9a9   :  { %3898 = vrcp.f32 %v2146_v36 }
 0x9ac   :  { %v2483_v27 = vpop.permute.xlu1 %2482 }
 0x9ad   :  { %3484 = vmatprep.subr.mxu1 %v2483_v27 }
 0x9ae   :  { %3485 = vmatpush3.msra.mxu1 %v2483_v27 }
 0x9af   :  { %3487 = vmatmul.mubr.msk.f32.vlgmr.msra.gmra.mrb[30].mxu1 %vm193_vm1, %v2179_v50 }
 0x9b3   :  { %v3899_v54 = vpop.eup %3898 }
 0x9b4   :  { %v2180_v58 = vmul.f32 %v3899_v54, %v4756_v60 }
 0x9b6   :  { %3489 = vmatprep.mubr.msk.f32.mxu1 %vm193_vm1, %v2180_v58 }
 0x9b7   :  { %3490 = vmatmul.mubr.msk.f32.gmra.mrb[32].mxu1 %vm193_vm1, %v2181_v30 }
 0x9e9   :  { %v3464_v40 = vpop.f32.mrb[30].mxu0 }
 0x9ea   :  { %v2263_v46 = vpop.f32.mrb[31].mxu0 }
 0x9ed   :  { %v3467_v29 = vpop.f32.mrb[32].mxu0 }
 0x9ee   :  { %v2273_v3 = vpop.f32.mrb[33].mxu0 }
 0xa4d   :  { %v3472_v32 = vpop.f32.mrb[26].mxu1  ;;  %v3480_v63 = vpop.f32.mrb[34].mxu0 }
 0xa4e   :  { %v2463_v9 = vpop.f32.mrb[35].mxu0  ;;  %2588 = vrot.lane.b32.xlu1 %v3472_v32, %s3949_s1  ;;  %v2363_v62 = vpop.f32.mrb[27].mxu1 }
 0xa4f   :  { %2586 = vrot.lane.b32.xlu0 %v2363_v62, %s3949_s1 }
 0xa51   :  { %v3475_v28 = vpop.f32.mrb[28].mxu1  ;;  %v3483_v2 = vpop.f32.mrb[36].mxu0 }
 0xa52   :  { %v2473_v13 = vpop.f32.mrb[37].mxu0  ;;  %2604 = vrot.lane.b32.xlu1 %v3480_v63, %s3950_s17  ;;  %v2373_v5 = vpop.f32.mrb[29].mxu1 }
 0xa53   :  { %2602 = vrot.lane.b32.xlu0 %v2463_v9, %s3950_s17 }
 0xa56   :  { %2592 = vrot.lane.b32.xlu1 %v3475_v28, %s3949_s1  ;;  %v2717_v28 = vld [vmem:[%s4967_s5] sm:$0xff] }
 0xa57   :  { %2590 = vrot.lane.b32.xlu0 %v2373_v5, %s3949_s1  ;;  %v2719_v5 = vld [vmem:[%s4967_s5 + $0x10] sm:$0xff] }
 0xa5a   :  { %2608 = vrot.lane.b32.xlu1 %v3483_v2, %s3950_s17  ;;  %v2718_v2 = vld [vmem:[%s4967_s5 + $0x8] sm:$0xff] }
 0xa5b   :  { %2606 = vrot.lane.b32.xlu0 %v2473_v13, %s3950_s17  ;;  %v3640_v13 = vpack.c.bf16 %v2718_v2, %v2717_v28 }
 0xa5d   :  { %3641 = vmatprep.subr.bf16.mxu0 %v3640_v13 }
 0xa5e   :  { %3643 = vmatpush3.bf16.msra.mxu0 %v3640_v13 }
 0xa82   :  { %v3488_v14 = vpop.f32.mrb[30].mxu1 }
 0xa83   :  { %2620 = vrot.lane.b32.xlu1 %v3488_v14, %s3951_s3  ;;  %v2563_v57 = vpop.f32.mrb[31].mxu1  ;;  %v2720_v14 = vld [vmem:[%s4967_s5 + $0x18] sm:$0xff] }
 0xa84   :  { %2618 = vrot.lane.b32.xlu0 %v2563_v57, %s3951_s3  ;;  %v3644_v57 = vpack.c.bf16 %v2720_v14, %v2719_v5 }
 0xa86   :  { %3645 = vmatprep.subr.bf16.mxu0 %v3644_v57 }
 0xa87   :  { %3647 = vmatpush3.bf16.msra.mxu0 %v3644_v57 }
 0xa8a   :  { %v3491_v4 = vpop.f32.mrb[32].mxu1 }
 0xa8b   :  { %2624 = vrot.lane.b32.xlu1 %v3491_v4, %s3951_s3  ;;  %v2573_v17 = vpop.f32.mrb[33].mxu1  ;;  %v2829_v4 = vld [vmem:[%s4969_s7] sm:$0xff] }
 0xa8c   :  { %2622 = vrot.lane.b32.xlu0 %v2573_v17, %s3951_s3  ;;  %v2830_v17 = vld [vmem:[%s4969_s7 + $0x8] sm:$0xff] }
 0xac0   :  { %v2589_v18 = vpop.permute.xlu1 %2588 }
 0xac1   :  { %v2587_v44 = vpop.permute.xlu0 %2586  ;;  %v2631_v11 = vsel %vm193_vm1, %v3464_v40, %v2589_v18  ;;  %v2831_v18 = vld [vmem:[%s4969_s7 + $0x10] sm:$0xff] }
 0xac2   :  { %v2630_v56 = vsel %vm193_vm1, %v2263_v46, %v2587_v44  ;;  %v3648_v44 = vpack.c.bf16 %v2830_v17, %v2829_v4 }
 0xac4   :  { %v2605_v8 = vpop.permute.xlu1 %2604  ;;  %3649 = vmatprep.subr.bf16.mxu1 %v3648_v44 }
 0xac5   :  { %v2603_v15 = vpop.permute.xlu0 %2602  ;;  %v2635_v6 = vsel %vm1286_vm3, %v2631_v11, %v2605_v8  ;;  %v2832_v8 = vld [vmem:[%s4969_s7 + $0x18] sm:$0xff]  ;;  %3651 = vmatpush3.bf16.msra.mxu1 %v3648_v44  ;;  %v3137_v44 = vld [vmem:[%s4970_s8] ss:$0 sm:$0xff] }
 0xac6   :  { %v2634_v20 = vsel %vm1286_vm3, %v2630_v56, %v2603_v15  ;;  %v3652_v15 = vpack.c.bf16 %v2832_v8, %v2831_v18  ;;  %v2836_v11 = vld [vmem:[%s4969_s7 + $0x38] sm:$0xff] }
 0xac8   :  { %v2593_v16 = vpop.permute.xlu1 %2592  ;;  %3653 = vmatprep.subr.bf16.mxu1 %v3652_v15 }
 0xac9   :  { %v2591_v60 = vpop.permute.xlu0 %2590  ;;  %v2633_v37 = vsel %vm193_vm1, %v3467_v29, %v2593_v16  ;;  %v2833_v16 = vld [vmem:[%s4969_s7 + $0x20] sm:$0xff]  ;;  %3655 = vmatpush3.bf16.msra.mxu1 %v3652_v15 }
 0xaca   :  { %v2632_v42 = vsel %vm193_vm1, %v2273_v3, %v2591_v60  ;;  %v2834_v60 = vld [vmem:[%s4969_s7 + $0x28] sm:$0xff] }
 0xacc   :  { %v2609_v25 = vpop.permute.xlu1 %2608 }
 0xacd   :  { %v2607_v12 = vpop.permute.xlu0 %2606  ;;  %v2637_v47 = vsel %vm1286_vm3, %v2633_v37, %v2609_v25  ;;  %v3656_v25 = vpack.c.bf16 %v2834_v60, %v2833_v16 }
 0xace   :  { %v2636_v49 = vsel %vm1286_vm3, %v2632_v42, %v2607_v12  ;;  %v2835_v12 = vld [vmem:[%s4969_s7 + $0x30] sm:$0xff] }
 0xacf   :  { %3657 = vmatprep.subr.bf16.mxu1 %v3656_v25  ;;  %v3660_v56 = vpack.c.bf16 %v2836_v11, %v2835_v12 }
 0xad0   :  { %3659 = vmatpush3.bf16.msra.mxu1 %v3656_v25 }
 0xad1   :  { %3661 = vmatprep.subr.bf16.mxu1 %v3660_v56 }
 0xad4   :  { %3663 = vmatpush3.bf16.msra.mxu1 %v3660_v56 }
 0xaf5   :  { %v2621_v33 = vpop.permute.xlu1 %2620 }
 0xaf6   :  { %v2639_v19 = vsel %vm1291_vm4, %v2635_v6, %v2621_v33  ;;  %v2619_v7 = vpop.permute.xlu0 %2618  ;;  %v2837_v6 = vld [vmem:[%s4969_s7 + $0x40] sm:$0xff]  ;;  %v2838_v33 = vld [vmem:[%s4969_s7 + $0x48] sm:$0xff] }
 0xaf7   :  { %v2643_v31 = vadd.f32 %v3916_v0, %v2639_v19  ;;  %v2638_v23 = vsel %vm1291_vm4, %v2634_v20, %v2619_v7  ;;  %v3664_v20 = vpack.c.bf16 %v2838_v33, %v2837_v6  ;;  %v2839_v19 = vld [vmem:[%s4969_s7 + $0x50] sm:$0xff]  ;;  %v2840_v7 = vld [vmem:[%s4969_s7 + $0x58] sm:$0xff] }
 0xaf8   :  { %v2642_v24 = vadd.f32 %v3917_v34, %v2638_v23  ;;  %v3668_v0 = vpack.c.bf16 %v2840_v7, %v2839_v19  ;;  %v2842_v23 = vld [vmem:[%s4969_s7 + $0x68] sm:$0xff] }
 0xaf9   :  { %v2651_v52 = vsel %vm59_vm0, %v2643_v31, 0.0  ;;  %3665 = vmatprep.subr.bf16.mxu1 %v3664_v20 }
 0xafa   :  { %2652 = vadd.xlane.f32.xlu1 %v2651_v52  ;;  %v2648_v1 = vsel %vm59_vm0, %v2642_v24, 0.0  ;;  %3667 = vmatpush3.bf16.msra.mxu1 %v3664_v20 }
 0xafb   :  { %2649 = vadd.xlane.f32.xlu0 %v2648_v1  ;;  %3669 = vmatprep.subr.bf16.mxu1 %v3668_v0 }
 0xafd   :  { %v2625_v38 = vpop.permute.xlu1 %2624 }
 0xafe   :  { %v2623_v35 = vpop.permute.xlu0 %2622  ;;  %v2641_v55 = vsel %vm1291_vm4, %v2637_v47, %v2625_v38  ;;  %3671 = vmatpush3.bf16.msra.mxu1 %v3668_v0 }
 0xaff   :  { %v2640_v45 = vsel %vm1291_vm4, %v2636_v49, %v2623_v35  ;;  %v2645_v59 = vadd.f32 %v3919_v48, %v2641_v55 }
 0xb00   :  { %v2644_v51 = vadd.f32 %v3918_v41, %v2640_v45 }
 0xb01   :  { %v2657_v43 = vsel %vm59_vm0, %v2645_v59, 0.0 }
 0xb02   :  { %v2654_v39 = vsel %vm59_vm0, %v2644_v51, 0.0 }
 0xb03   :  { %2655 = vadd.xlane.f32.xlu0 %v2654_v39 }
 0xb07   :  { %2658 = vadd.xlane.f32.xlu0 %v2657_v43 }
 0xb87   :  { %v2653_v21 = vpop.xlane.xlu1 %2652 }
 0xb88   :  { %v2662_v26 = vmul.f32 0.03125, %v2653_v21  ;;  %v2650_v53 = vpop.xlane.xlu0 %2649  ;;  %v3131_v21 = vld [vmem:[%s4971_s9 + $0x1] ss:$0 sm:$0xff] }
 0xb89   :  { %v2661_v10 = vmul.f32 0.03125, %v2650_v53 }
 0xb8a   :  { %v4831_v36 = vsub.f32 %v2643_v31, %v2662_v26  ;;  %v2841_v31 = vld [vmem:[%s4969_s7 + $0x60] sm:$0xff] }
 0xb8b   :  { %v4833_v22 = vsub.f32 %v2642_v24, %v2661_v10  ;;  %v3672_v34 = vpack.c.bf16 %v2842_v23, %v2841_v31 }
 0xb8c   :  { %v2670_v27 = vmul.f32 %v4831_v36, %v4831_v36 }
 0xb8d   :  { %v2669_v50 = vmul.f32 %v4833_v22, %v4833_v22  ;;  %3673 = vmatprep.subr.bf16.mxu1 %v3672_v34 }
 0xb8e   :  { %v2676_v61 = vsel %vm59_vm0, %v2670_v27, 0.0  ;;  %3675 = vmatpush3.bf16.msra.mxu1 %v3672_v34 }
 0xb8f   :  { %2677 = vadd.xlane.f32.xlu0 %v2676_v61  ;;  %v2673_v54 = vsel %vm59_vm0, %v2669_v50, 0.0 }
 0xb90   :  { %2674 = vadd.xlane.f32.xlu1 %v2673_v54  ;;  %v2656_v58 = vpop.xlane.xlu0 %2655 }
 0xb91   :  { %v2663_v30 = vmul.f32 0.03125, %v2656_v58 }
 0xb93   :  { %v4841_v40 = vsub.f32 %v2644_v51, %v2663_v30  ;;  %v3130_v51 = vld [vmem:[%s4971_s9] ss:$0 sm:$0xff] }
 0xb94   :  { %v2659_v46 = vpop.xlane.xlu0 %2658 }
 0xb95   :  { %v2664_v29 = vmul.f32 0.03125, %v2659_v46  ;;  %v2671_v3 = vmul.f32 %v4841_v40, %v4841_v40 }
 0xb97   :  { %v4845_v32 = vsub.f32 %v2645_v59, %v2664_v29  ;;  %v2679_v63 = vsel %vm59_vm0, %v2671_v3, 0.0  ;;  %v2843_v29 = vld [vmem:[%s4969_s7 + $0x70] sm:$0xff]  ;;  %v2844_v3 = vld [vmem:[%s4969_s7 + $0x78] sm:$0xff] }
 0xb98   :  { %2680 = vadd.xlane.f32.xlu1 %v2679_v63 }
 0xb99   :  { %v2672_v9 = vmul.f32 %v4845_v32, %v4845_v32 }
 0xb9b   :  { %v2682_v62 = vsel %vm59_vm0, %v2672_v9, 0.0 }
 0xb9c   :  { %2683 = vadd.xlane.f32.xlu0 %v2682_v62 }
 0xc1c   :  { %v2678_v24 = vpop.xlane.xlu0 %2677 }
 0xc1d   :  { %v2686_v52 = vmul.f32 0.03125, %v2678_v24  ;;  %v2675_v1 = vpop.xlane.xlu1 %2674 }
 0xc1e   :  { %v2685_v37 = vmul.f32 0.03125, %v2675_v1 }
 0xc1f   :  { %v2690_v42 = vadd.f32 1e-12, %v2686_v52 }
 0xc20   :  { %v2689_v38 = vadd.f32 1e-12, %v2685_v37 }
 0xc21   :  { %3900 = vrsqrt.f32 %v2690_v42 }
 0xc22   :  { %3902 = vrsqrt.f32 %v2689_v38 }
 0xc25   :  { %v2681_v47 = vpop.xlane.xlu1 %2680 }
 0xc26   :  { %v2687_v49 = vmul.f32 0.03125, %v2681_v47 }
 0xc28   :  { %v2691_v35 = vadd.f32 1e-12, %v2687_v49 }
 0xc29   :  { %v2684_v55 = vpop.xlane.xlu0 %2683 }
 0xc2a   :  { %3904 = vrsqrt.f32 %v2691_v35  ;;  %v2688_v45 = vmul.f32 0.03125, %v2684_v55 }
 0xc2b   :  { %v3901_v41 = vpop.eup %3900 }
 0xc2c   :  { %v3903_v48 = vpop.eup %3902  ;;  %v2698_v59 = vmul.f32 %v3901_v41, %v4831_v36  ;;  %v2692_v39 = vadd.f32 1e-12, %v2688_v45 }
 0xc2d   :  { %v2697_v43 = vmul.f32 %v3903_v48, %v4833_v22 }
 0xc2e   :  { %3906 = vrsqrt.f32 %v2692_v39  ;;  %v2706_v26 = vmul.f32 %v3130_v51, %v2698_v59 }
 0xc2f   :  { %v2705_v53 = vmul.f32 %v3130_v51, %v2697_v43 }
 0xc30   :  { %v2714_v27 = vadd.f32 %v3131_v21, %v2706_v26 }
 0xc31   :  { %v2713_v10 = vadd.f32 %v3131_v21, %v2705_v53 }
 0xc33   :  { %3500 = vmatprep.mubr.msk.f32.mxu0 %vm59_vm0, %v2713_v10 }
 0xc34   :  { %v3905_v50 = vpop.eup %3904  ;;  %3501 = vmatmul.mubr.msk.f32.vlgmr.msra.gmra.mrb[38].mxu0 %vm59_vm0, %v2714_v27 }
 0xc35   :  { %v2699_v61 = vmul.f32 %v3905_v50, %v4841_v40  ;;  %v3676_v40 = vpack.c.bf16 %v2844_v3, %v2843_v29  ;;  %v3138_v3 = vld [vmem:[%s4971_s9 + $0x2] ss:$0 sm:$0xff] }
 0xc37   :  { %v2707_v36 = vmul.f32 %v3130_v51, %v2699_v61  ;;  %3677 = vmatprep.subr.bf16.mxu1 %v3676_v40 }
 0xc38   :  { %v3907_v54 = vpop.eup %3906  ;;  %3679 = vmatpush3.bf16.msra.mxu1 %v3676_v40 }
 0xc39   :  { %v2715_v58 = vadd.f32 %v3131_v21, %v2707_v36  ;;  %v2700_v22 = vmul.f32 %v3907_v54, %v4845_v32  ;;  %v3132_v32 = vld [vmem:[%s4968_s6] ss:$0 sm:$0xff] }
 0xc3b   :  { %3503 = vmatprep.mubr.msk.f32.mxu0 %vm59_vm0, %v2715_v58  ;;  %v2708_v30 = vmul.f32 %v3130_v51, %v2700_v22 }
 0xc3d   :  { %v2716_v46 = vadd.f32 %v3131_v21, %v2708_v30 }
 0xc3f   :  { %3504 = vmatmul.mubr.msk.f32.gmra.mrb[40].mxu0 %vm59_vm0, %v2716_v46 }
 0xd07   :  { %v3502_v63 = vpop.f32.mrb[38].mxu0 }
 0xd08   :  { %v2812_v9 = vadd.f32 %v3502_v63, %v3132_v32  ;;  %v2806_v62 = vpop.f32.mrb[39].mxu0 }
 0xd09   :  { %v2807_v28 = vadd.f32 %v3132_v32, %v2806_v62 }
 0xd0a   :  { %v2826_v13 = vmax.f32 %v2812_v9, 0.0  ;;  %v3139_v9 = vld [vmem:[%s4971_s9 + $0x3] ss:$0 sm:$0xff]  ;;  %s3920_s9 = scalar_lea.vmem %s3021_s0, 512 }
 0xd0b   :  { %v2825_v2 = vmax.f32 %v2807_v28, 0.0  ;;  %p3921_p0 = scmp.ne.s32.totalorder %s3021_s0, %s3920_s9  ;;  %p3926_p2 = scmp.lt.s32.totalorder %s3920_s9, %s3920_s9 }
 0xd0d   :  { %3538 = vmatprep.mubr.f32.mxu1 %v2825_v2  ;;  %p3927_p3 = por %p3926_p2, %p3925_p1 }
 0xd0e   :  { %3539 = vmatmul.mubr.f32.vlgmr.msra.gmra.mrb[34].mxu1 %v2826_v13 }
 0xd0f   :  { %p3928_p4 = pnand %p3927_p3, %p3921_p0 }
 0xd12   :  { %v3505_v5 = vpop.f32.mrb[40].mxu0 }
 0xd13   :  { %v2822_v14 = vadd.f32 %v3505_v5, %v3132_v32  ;;  %v2816_v57 = vpop.f32.mrb[41].mxu0 }
 0xd14   :  { %v2817_v4 = vadd.f32 %v3132_v32, %v2816_v57 }
 0xd15   :  { %v2828_v18 = vmax.f32 %v2822_v14, 0.0 }
 0xd16   :  { %v2827_v17 = vmax.f32 %v2817_v4, 0.0 }
 0xd18   :  { %3541 = vmatprep.mubr.f32.mxu1 %v2827_v17 }
 0xd19   :  { %3542 = vmatmul.mubr.f32.gmra.mrb[36].mxu1 %v2828_v18 }
 0xde1   :  { %v3540_v8 = vpop.f32.mrb[34].mxu1 }
 0xde2   :  { %v2924_v15 = vadd.f32 %v3540_v8, %v3137_v44  ;;  %v2918_v16 = vpop.f32.mrb[35].mxu1 }
 0xde3   :  { %v2919_v60 = vadd.f32 %v3137_v44, %v2918_v16 }
 0xde4   :  { %v2938_v25 = vadd.f32 %v2924_v15, %v2714_v27 }
 0xde5   :  { %v2937_v12 = vadd.f32 %v2919_v60, %v2713_v10 }
 0xde6   :  { %v2946_v11 = vsel %vm59_vm0, %v2938_v25, 0.0 }
 0xde7   :  { %2947 = vadd.xlane.f32.xlu0 %v2946_v11  ;;  %v2943_v56 = vsel %vm59_vm0, %v2937_v12, 0.0 }
 0xde8   :  { %2944 = vadd.xlane.f32.xlu1 %v2943_v56 }
 0xdec   :  { %v3543_v6 = vpop.f32.mrb[36].mxu1 }
 0xded   :  { %v2934_v33 = vadd.f32 %v3543_v6, %v3137_v44  ;;  %v2928_v20 = vpop.f32.mrb[37].mxu1 }
 0xdee   :  { %v2929_v19 = vadd.f32 %v3137_v44, %v2928_v20 }
 0xdef   :  { %v2940_v7 = vadd.f32 %v2934_v33, %v2716_v46 }
 0xdf0   :  { %v2939_v0 = vadd.f32 %v2929_v19, %v2715_v58 }
 0xdf1   :  { %v2952_v31 = vsel %vm59_vm0, %v2940_v7, 0.0 }
 0xdf2   :  { %2953 = vadd.xlane.f32.xlu0 %v2952_v31  ;;  %v2949_v23 = vsel %vm59_vm0, %v2939_v0, 0.0 }
 0xdf3   :  { %2950 = vadd.xlane.f32.xlu1 %v2949_v23 }
 0xe74   :  { %v2948_v34 = vpop.xlane.xlu0 %2947 }
 0xe75   :  { %v2956_v24 = vmul.f32 0.03125, %v2948_v34  ;;  %v2945_v52 = vpop.xlane.xlu1 %2944 }
 0xe76   :  { %v2955_v1 = vmul.f32 0.03125, %v2945_v52 }
 0xe77   :  { %v2960_v37 = vsub.f32 %v2938_v25, %v2956_v24 }
 0xe78   :  { %v2959_v42 = vsub.f32 %v2937_v12, %v2955_v1 }
 0xe79   :  { %v2964_v38 = vmul.f32 %v2960_v37, %v2960_v37 }
 0xe7a   :  { %v2963_v47 = vmul.f32 %v2959_v42, %v2959_v42 }
 0xe7b   :  { %v2970_v49 = vsel %vm59_vm0, %v2964_v38, 0.0 }
 0xe7c   :  { %2971 = vadd.xlane.f32.xlu0 %v2970_v49  ;;  %v2967_v35 = vsel %vm59_vm0, %v2963_v47, 0.0 }
 0xe7d   :  { %2968 = vadd.xlane.f32.xlu1 %v2967_v35 }
 0xe7f   :  { %v2954_v55 = vpop.xlane.xlu0 %2953 }
 0xe80   :  { %v2958_v45 = vmul.f32 0.03125, %v2954_v55  ;;  %v2951_v41 = vpop.xlane.xlu1 %2950 }
 0xe81   :  { %v2957_v51 = vmul.f32 0.03125, %v2951_v41 }
 0xe82   :  { %v2962_v48 = vsub.f32 %v2940_v7, %v2958_v45 }
 0xe83   :  { %v2961_v59 = vsub.f32 %v2939_v0, %v2957_v51 }
 0xe84   :  { %v2966_v39 = vmul.f32 %v2962_v48, %v2962_v48 }
 0xe85   :  { %v2965_v43 = vmul.f32 %v2961_v59, %v2961_v59 }
 0xe86   :  { %v2976_v21 = vsel %vm59_vm0, %v2966_v39, 0.0 }
 0xe87   :  { %2977 = vadd.xlane.f32.xlu0 %v2976_v21  ;;  %v2973_v26 = vsel %vm59_vm0, %v2965_v43, 0.0 }
 0xe88   :  { %2974 = vadd.xlane.f32.xlu1 %v2973_v26 }
 0xf09   :  { %v2972_v53 = vpop.xlane.xlu0 %2971 }
 0xf0a   :  { %v2980_v10 = vmul.f32 0.03125, %v2972_v53  ;;  %v2969_v27 = vpop.xlane.xlu1 %2968 }
 0xf0b   :  { %v2979_v50 = vmul.f32 0.03125, %v2969_v27 }
 0xf0c   :  { %v2984_v61 = vadd.f32 1e-12, %v2980_v10 }
 0xf0d   :  { %v2983_v36 = vadd.f32 1e-12, %v2979_v50 }
 0xf0e   :  { %3908 = vrsqrt.f32 %v2984_v61 }
 0xf0f   :  { %3910 = vrsqrt.f32 %v2983_v36 }
 0xf14   :  { %v2978_v54 = vpop.xlane.xlu0 %2977 }
 0xf15   :  { %v2982_v58 = vmul.f32 0.03125, %v2978_v54  ;;  %v2975_v22 = vpop.xlane.xlu1 %2974 }
 0xf16   :  { %v2981_v30 = vmul.f32 0.03125, %v2975_v22 }
 0xf17   :  { %v2986_v46 = vadd.f32 1e-12, %v2982_v58 }
 0xf18   :  { %v3909_v29 = vpop.eup %3908  ;;  %v2985_v40 = vadd.f32 1e-12, %v2981_v30 }
 0xf19   :  { %v3911_v32 = vpop.eup %3910  ;;  %v2992_v63 = vmul.f32 %v3909_v29, %v2960_v37  ;;  %3912 = vrsqrt.f32 %v2986_v46 }
 0xf1a   :  { %v2991_v62 = vmul.f32 %v3911_v32, %v2959_v42  ;;  %3914 = vrsqrt.f32 %v2985_v40 }
 0xf1b   :  { %v3000_v28 = vmul.f32 %v3138_v3, %v2992_v63 }
 0xf1c   :  { %v2999_v2 = vmul.f32 %v3138_v3, %v2991_v62 }
 0xf1d   :  { %v3008_v13 = vadd.f32 %v3139_v9, %v3000_v28 }
 0xf1e   :  { %v3007_v5 = vadd.f32 %v3139_v9, %v2999_v2 }
 0xf1f   :  { %3012 = vst.msk [vmem:[#allocation2 + $0x8] sm:$0xff] %vm59_vm0, %v3008_v13 }
 0xf20   :  { %3011 = vst.msk [vmem:[#allocation2] sm:$0xff] %vm59_vm0, %v3007_v5 }
 0xf23   :  { %v3913_v14 = vpop.eup %3912 }
 0xf24   :  { %v3915_v57 = vpop.eup %3914  ;;  %v2994_v4 = vmul.f32 %v3913_v14, %v2962_v48 }
 0xf25   :  { %v2993_v17 = vmul.f32 %v3915_v57, %v2961_v59 }
 0xf26   :  { %v3002_v18 = vmul.f32 %v3138_v3, %v2994_v4 }
 0xf27   :  { %v3001_v44 = vmul.f32 %v3138_v3, %v2993_v17 }
 0xf28   :  { %v3010_v8 = vadd.f32 %v3139_v9, %v3002_v18 }
 0xf29   :  { %v3009_v15 = vadd.f32 %v3139_v9, %v3001_v44 }
 0xf2a   :  { %3014 = vst.msk [vmem:[#allocation2 + $0x18] sm:$0xff] %vm59_vm0, %v3010_v8 }
 0xf2b   :  { %3013 = vst.msk [vmem:[#allocation2 + $0x10] sm:$0xff] %vm59_vm0, %v3009_v15 }
 0xf2c   :  { %3931 = shalt.err (!%p3928_p4)
}
 0xf2d   :  { %s3932_s16 = scalar_lea.hbm %s4972_s10, 512 }
 0xf2e   :  { %p3933_p5 = scmp.ne.s32.totalorder %s4972_s10, %s3932_s16  ;;  %p3936_p6 = scmp.lt.u32.totalorder %s3932_s16, %s4972_s10 }
 0xf30   :  { %p3938_p7 = pnand %p3936_p6, %p3933_p5 }
 0xf32   :  { %3941 = shalt.err (!%p3938_p7)
}
 0xf33   :  { %s3953_s4 = smov 128  }
 0xf34   :  { %3026 = dma.vmem_to_hbm [thread:$0]  %s3021_s0, 512, %s4972_s10, [#allocation3], %s3953_s4, %s3953_s4, %s3949_s1  }
 0xf35   :  { %3942 = dma.done.wait [#allocation3], 512  }
 0xf36   :  { %3943 = vsyncadd [#allocation3], 4294966784 }
 0xf37   :  { %3030 = vsyncpa [#allocation3], 1 }

</bundles_post_ra>
